<compile_context>
chip_gen: v7x
topology: tpu7x:2x2x1
jax: 0.10.0
libtpu: 0.0.40
codegen_flags: <defaults>
</compile_context>

<pallas_src>
import jax
import jax.numpy as jnp
from jax.experimental import pallas as pl
from jax.experimental.pallas import tpu as pltpu

LATENT_DIM = 32
H1 = 256
H2 = 512
OUT = 28 * 28          # 784 (not lane-aligned)
OUT_PAD = 896          # 7 * 128 — lane-aligned width for the last matmul


def _round_up(x, m):
    return ((x + m - 1) // m) * m


def _leaky_relu(x, slope=0.2):
    # slope < 1 -> max(x, slope*x) == leaky_relu(x); 2 VALU ops instead of 3.
    return jnp.maximum(x, slope * x)


def generator_kernel(z_ref, w1_ref, b1_ref, w2_ref, b2_ref, w3_ref, b3_ref, o_ref):
    # Weights are bf16 and stay bf16 (native MXU path).  Activations are cast
    # to bf16 right before each dot; accumulation and all elementwise math
    # (bias add, leaky-relu, tanh) stay f32.
    # Layer 1: [TB, 32] @ [32, 256] + [1, 256]
    h = jnp.dot(z_ref[...].astype(jnp.bfloat16), w1_ref[...],
                preferred_element_type=jnp.float32)
    h = _leaky_relu(h + b1_ref[...])
    # Layer 2: [TB, 256] @ [256, 512] + [1, 512]
    h = jnp.dot(h.astype(jnp.bfloat16), w2_ref[...],
                preferred_element_type=jnp.float32)
    h = _leaky_relu(h + b2_ref[...])
    # Layer 3 (lane-padded weights): [TB, 512] @ [512, 896] + [1, 896],
    # tanh on EUP, then store only the real 784 columns.
    h = jnp.dot(h.astype(jnp.bfloat16), w3_ref[...],
                preferred_element_type=jnp.float32)
    o_ref[...] = jnp.tanh(h + b3_ref[...])[:, :OUT].astype(o_ref.dtype)


def generator_forward(z, packed_params, *, max_tb=512, out_bf16=False):
    """z: [B, LATENT_DIM] f32, packed_params from pack_params -> [B, 1, 28, 28]."""
    w1, b1, w2, b2, w3p, b3p = packed_params
    B, ld = z.shape
    assert ld == LATENT_DIM

    # Batch tile: multiple of 8 (sublane), capped at max_tb.
    TB = min(max_tb, _round_up(B, 8))
    Bp = _round_up(B, TB)
    # v7x megacore: if the whole batch fits in one tile but is big enough,
    # split it so the parallel grid axis has >= 2 steps (one per TensorCore).
    if Bp // TB == 1 and Bp >= 16:
        TB = _round_up(Bp // 2, 8)
        Bp = _round_up(B, TB)
    if Bp != B:
        z = jnp.pad(z, ((0, Bp - B), (0, 0)))

    resident = lambda shape: pl.BlockSpec(shape, lambda i: (0, 0))

    out_dtype = jnp.bfloat16 if out_bf16 else jnp.float32
    out_elem_bytes = 2 if out_bf16 else 4

    flops = 2 * Bp * (LATENT_DIM * H1 + H1 * H2 + H2 * OUT_PAD)
    bytes_accessed = (
        Bp * LATENT_DIM * 4                                   # z in (f32)
        + (w1.size + w2.size + w3p.size) * 2                  # bf16 weights
        + (b1.size + b2.size + b3p.size) * 4                  # f32 biases
        + Bp * OUT * out_elem_bytes                           # output
    )
    cost = pl.CostEstimate(flops=flops,
                           transcendentals=Bp * OUT_PAD,
                           bytes_accessed=bytes_accessed)

    out_flat = pl.pallas_call(
        generator_kernel,
        out_shape=jax.ShapeDtypeStruct((Bp, OUT), out_dtype),
        grid=(Bp // TB,),
        in_specs=[
            pl.BlockSpec((TB, LATENT_DIM), lambda i: (i, 0)),  # batch-tiled z
            resident((LATENT_DIM, H1)),                        # weights stay
            resident((1, H1)),                                 # VMEM-resident
            resident((H1, H2)),
            resident((1, H2)),
            resident((H2, OUT_PAD)),
            resident((1, OUT_PAD)),
        ],
        # 784 == full last dim of the output array, so this block is legal
        # even though 784 is not a multiple of 128.
        out_specs=pl.BlockSpec((TB, OUT), lambda i: (i, 0)),
        compiler_params=pltpu.CompilerParams(
            dimension_semantics=("parallel",)),
        cost_estimate=cost,
    )(z, w1, b1, w2, b2, w3p, b3p)

    # Drop batch padding (no-op when Bp == B), match torch's .view(-1,1,28,28).
    return out_flat[:B].reshape(B, 1, 28, 28)


def init_params(key):
    """Deterministic synthetic init mimicking torch's Linear init bounds (f32)."""
    ks = jax.random.split(key, 6)

    def linear(kw, kb, fan_in, fan_out):
        bound = 1.0 / jnp.sqrt(fan_in)
        w = jax.random.uniform(kw, (fan_in, fan_out), jnp.float32, -bound, bound)
        b = jax.random.uniform(kb, (1, fan_out), jnp.float32, -bound, bound)
        return w, b

    w1, b1 = linear(ks[0], ks[1], LATENT_DIM, H1)
    w2, b2 = linear(ks[2], ks[3], H1, H2)
    w3, b3 = linear(ks[4], ks[5], H2, OUT)
    return (w1, b1, w2, b2, w3, b3)


def pack_params(params_f32):
    """Cast weights to bf16 and zero-pad the last layer to OUT_PAD lanes."""
    w1, b1, w2, b2, w3, b3 = params_f32
    w3p = jnp.pad(w3, ((0, 0), (0, OUT_PAD - OUT)))
    b3p = jnp.pad(b3, ((0, 0), (0, OUT_PAD - OUT)))
    return (w1.astype(jnp.bfloat16), b1,
            w2.astype(jnp.bfloat16), b2,
            w3p.astype(jnp.bfloat16), b3p)


def reference_forward(z, packed_params):
    """Pure-JAX reference mirroring the kernel's bf16-in / f32-accumulate math."""
    w1, b1, w2, b2, w3p, b3p = packed_params
    h = jnp.dot(z.astype(jnp.bfloat16), w1,
                preferred_element_type=jnp.float32) + b1
    h = jnp.maximum(h, 0.2 * h)
    h = jnp.dot(h.astype(jnp.bfloat16), w2,
                preferred_element_type=jnp.float32) + b2
    h = jnp.maximum(h, 0.2 * h)
    o = jnp.tanh(jnp.dot(h.astype(jnp.bfloat16), w3p,
                         preferred_element_type=jnp.float32) + b3p)
    return o[:, :OUT].reshape(-1, 1, 28, 28)


if __name__ == "__main__":
    key = jax.random.PRNGKey(0)
    k_z, k_p = jax.random.split(key)

    batch = 8
    z = jax.random.normal(k_z, (batch, LATENT_DIM), dtype=jnp.float32)
    params = pack_params(init_params(k_p))

    out = generator_forward(z, params)
    out = jax.block_until_ready(out)

    assert out.shape == (batch, 1, 28, 28), out.shape
    ref = reference_forward(z, params)
    # bf16 MXU inputs -> allow for bf16-rounding / accumulation-order noise.
    assert jnp.allclose(out, ref, atol=2e-3, rtol=2e-3), "mismatch vs reference"

    # TODO(synk): for repeated tiny-batch inference, pin/prefetch the ~1.2 MB
    # bf16 weights across calls (cross-call DMA future) instead of re-streaming.

    print("KERNEL_OK")
</pallas_src>

<mosaic_0001>
module attributes {stable_mosaic.version = 11 : i64} {
  func.func @generator_kernel(%arg0: i32, %arg1: memref<8x32xf32, #tpu.memory_space<vmem>>, %arg2: memref<32x256xbf16, #tpu.memory_space<vmem>>, %arg3: memref<1x256xf32, #tpu.memory_space<vmem>>, %arg4: memref<256x512xbf16, #tpu.memory_space<vmem>>, %arg5: memref<1x512xf32, #tpu.memory_space<vmem>>, %arg6: memref<512x896xbf16, #tpu.memory_space<vmem>>, %arg7: memref<1x896xf32, #tpu.memory_space<vmem>>, %arg8: memref<8x784xf32, #tpu.memory_space<vmem>>) attributes {dimension_semantics = [#tpu.dimension_semantics<parallel>], iteration_bounds = array<i64: 1>, scalar_prefetch = 0 : i64, scratch_operands = 0 : i64, tpu.core_type = #tpu.core_type<tc>, window_params = [{transform_indices = @transform_0, window_bounds = array<i64: 8, 32>}, {pipeline_mode = #tpu.pipeline_mode<synchronous>, transform_indices = @transform_1, window_bounds = array<i64: 32, 256>}, {pipeline_mode = #tpu.pipeline_mode<synchronous>, transform_indices = @transform_2, window_bounds = array<i64: 1, 256>}, {pipeline_mode = #tpu.pipeline_mode<synchronous>, transform_indices = @transform_3, window_bounds = array<i64: 256, 512>}, {pipeline_mode = #tpu.pipeline_mode<synchronous>, transform_indices = @transform_4, window_bounds = array<i64: 1, 512>}, {pipeline_mode = #tpu.pipeline_mode<synchronous>, transform_indices = @transform_5, window_bounds = array<i64: 512, 896>}, {pipeline_mode = #tpu.pipeline_mode<synchronous>, transform_indices = @transform_6, window_bounds = array<i64: 1, 896>}, {transform_indices = @transform_7, window_bounds = array<i64: 8, 784>}]} {
    %c0 = arith.constant 0 : index
    %c0_0 = arith.constant 0 : index
    %0 = vector.load %arg1[%c0, %c0_0] : memref<8x32xf32, #tpu.memory_space<vmem>>, vector<8x32xf32>
    %1 = arith.truncf %0 : vector<8x32xf32> to vector<8x32xbf16>
    %c0_1 = arith.constant 0 : index
    %c0_2 = arith.constant 0 : index
    %2 = vector.load %arg2[%c0_1, %c0_2] : memref<32x256xbf16, #tpu.memory_space<vmem>>, vector<32x256xbf16>
    %cst = arith.constant dense<0.000000e+00> : vector<8x256xf32>
    %3 = tpu.matmul %1, %2, %cst {dimension_numbers = #tpu.dot_dimension_numbers<[1], [0], [0], [1], [0, 0, 1, 1], [], []>} : vector<8x32xbf16>, vector<32x256xbf16>, vector<8x256xf32> -> vector<8x256xf32>
    %c0_3 = arith.constant 0 : index
    %c0_4 = arith.constant 0 : index
    %4 = vector.load %arg3[%c0_3, %c0_4] : memref<1x256xf32, #tpu.memory_space<vmem>>, vector<1x256xf32>
    %5 = vector.broadcast %4 : vector<1x256xf32> to vector<8x256xf32>
    %6 = arith.addf %3, %5 : vector<8x256xf32>
    %cst_5 = arith.constant 2.000000e-01 : f32
    %7 = vector.broadcast %cst_5 : f32 to vector<8x256xf32>
    %8 = arith.mulf %7, %6 : vector<8x256xf32>
    %9 = arith.maximumf %6, %8 : vector<8x256xf32>
    %10 = arith.truncf %9 : vector<8x256xf32> to vector<8x256xbf16>
    %c0_6 = arith.constant 0 : index
    %c0_7 = arith.constant 0 : index
    %11 = vector.load %arg4[%c0_6, %c0_7] : memref<256x512xbf16, #tpu.memory_space<vmem>>, vector<256x512xbf16>
    %cst_8 = arith.constant dense<0.000000e+00> : vector<8x512xf32>
    %12 = tpu.matmul %10, %11, %cst_8 {dimension_numbers = #tpu.dot_dimension_numbers<[1], [0], [0], [1], [0, 0, 1, 1], [], []>} : vector<8x256xbf16>, vector<256x512xbf16>, vector<8x512xf32> -> vector<8x512xf32>
    %c0_9 = arith.constant 0 : index
    %c0_10 = arith.constant 0 : index
    %13 = vector.load %arg5[%c0_9, %c0_10] : memref<1x512xf32, #tpu.memory_space<vmem>>, vector<1x512xf32>
    %14 = vector.broadcast %13 : vector<1x512xf32> to vector<8x512xf32>
    %15 = arith.addf %12, %14 : vector<8x512xf32>
    %cst_11 = arith.constant 2.000000e-01 : f32
    %16 = vector.broadcast %cst_11 : f32 to vector<8x512xf32>
    %17 = arith.mulf %16, %15 : vector<8x512xf32>
    %18 = arith.maximumf %15, %17 : vector<8x512xf32>
    %19 = arith.truncf %18 : vector<8x512xf32> to vector<8x512xbf16>
    %c0_12 = arith.constant 0 : index
    %c0_13 = arith.constant 0 : index
    %20 = vector.load %arg6[%c0_12, %c0_13] : memref<512x896xbf16, #tpu.memory_space<vmem>>, vector<512x896xbf16>
    %cst_14 = arith.constant dense<0.000000e+00> : vector<8x896xf32>
    %21 = tpu.matmul %19, %20, %cst_14 {dimension_numbers = #tpu.dot_dimension_numbers<[1], [0], [0], [1], [0, 0, 1, 1], [], []>} : vector<8x512xbf16>, vector<512x896xbf16>, vector<8x896xf32> -> vector<8x896xf32>
    %c0_15 = arith.constant 0 : index
    %c0_16 = arith.constant 0 : index
    %22 = vector.load %arg7[%c0_15, %c0_16] : memref<1x896xf32, #tpu.memory_space<vmem>>, vector<1x896xf32>
    %23 = vector.broadcast %22 : vector<1x896xf32> to vector<8x896xf32>
    %24 = arith.addf %21, %23 : vector<8x896xf32>
    %25 = math.tanh %24 : vector<8x896xf32>
    %26 = vector.extract_strided_slice %25 {offsets = [0, 0], sizes = [8, 784], strides = [1, 1]} : vector<8x896xf32> to vector<8x784xf32>
    %c0_17 = arith.constant 0 : index
    %c0_18 = arith.constant 0 : index
    %27 = vector.load %arg8[%c0_17, %c0_18] : memref<8x784xf32, #tpu.memory_space<vmem>>, vector<8x784xf32>
    tpu.vector_store %arg8[%c0_17, %c0_18], %26 {strides = array<i32>} : memref<8x784xf32, #tpu.memory_space<vmem>>, vector<8x784xf32>,
    return
  }
  func.func @transform_0(%arg0: i32) -> (i32, i32) {
    %c0_i32 = arith.constant 0 : i32
    %c0_i32_0 = arith.constant 0 : i32
    return %arg0, %c0_i32 : i32, i32
  }
  func.func @transform_1(%arg0: i32) -> (i32, i32) {
    %c0_i32 = arith.constant 0 : i32
    %c0_i32_0 = arith.constant 0 : i32
    %c0_i32_1 = arith.constant 0 : i32
    return %c0_i32, %c0_i32_0 : i32, i32
  }
  func.func @transform_2(%arg0: i32) -> (i32, i32) {
    %c0_i32 = arith.constant 0 : i32
    %c0_i32_0 = arith.constant 0 : i32
    %c0_i32_1 = arith.constant 0 : i32
    return %c0_i32, %c0_i32_0 : i32, i32
  }
  func.func @transform_3(%arg0: i32) -> (i32, i32) {
    %c0_i32 = arith.constant 0 : i32
    %c0_i32_0 = arith.constant 0 : i32
    %c0_i32_1 = arith.constant 0 : i32
    return %c0_i32, %c0_i32_0 : i32, i32
  }
  func.func @transform_4(%arg0: i32) -> (i32, i32) {
    %c0_i32 = arith.constant 0 : i32
    %c0_i32_0 = arith.constant 0 : i32
    %c0_i32_1 = arith.constant 0 : i32
    return %c0_i32, %c0_i32_0 : i32, i32
  }
  func.func @transform_5(%arg0: i32) -> (i32, i32) {
    %c0_i32 = arith.constant 0 : i32
    %c0_i32_0 = arith.constant 0 : i32
    %c0_i32_1 = arith.constant 0 : i32
    return %c0_i32, %c0_i32_0 : i32, i32
  }
  func.func @transform_6(%arg0: i32) -> (i32, i32) {
    %c0_i32 = arith.constant 0 : i32
    %c0_i32_0 = arith.constant 0 : i32
    %c0_i32_1 = arith.constant 0 : i32
    return %c0_i32, %c0_i32_0 : i32, i32
  }
  func.func @transform_7(%arg0: i32) -> (i32, i32) {
    %c0_i32 = arith.constant 0 : i32
    %c0_i32_0 = arith.constant 0 : i32
    return %arg0, %c0_i32 : i32, i32
  }
}

</mosaic_0001>

<bundles_post_ra>
// kernel: tpu_custom_call.1
= control target key start
LH: loop header
LB: loop body
LE: loop exit
PB: predicated region body
PF: predicated region fallthrough
CT: control target
= control target key end

     0   :  { %12 = vsyncpa [#allocation3], 0  ;;  %s3575_s0 = inlined_call_operand.hbm [shape: f32[8,32], index: 0, kind: input, shape index: {}]   ;;  %s3576_s1 = inlined_call_operand.hbm [shape: bf16[32,256], index: 1, kind: input, shape index: {}]   ;;  %s3577_s2 = inlined_call_operand.vmem [shape: f32[1,256], index: 2, kind: input, shape index: {}]   ;;  %s3578_s3 = inlined_call_operand.hbm [shape: bf16[256,512], index: 3, kind: input, shape index: {}]   ;;  %s3579_s4 = inlined_call_operand.vmem [shape: f32[1,512], index: 4, kind: input, shape index: {}]   ;;  %s3580_s5 = inlined_call_operand.hbm [shape: bf16[512,896], index: 5, kind: input, shape index: {}]   ;;  %s3581_s6 = inlined_call_operand.vmem [shape: f32[1,896], index: 6, kind: input, shape index: {}]   ;;  %s3582_s7 = inlined_call_operand.hbm [shape: f32[8,784], index: 7, kind: output, shape index: {}]  }
   0x1   :  { %13 = vsyncpa [#allocation6], 0 }
   0x2   :  { %14 = vsyncpa [#allocation9], 0 }
   0x3   :  { %15 = vsyncpa [#allocation4], 0  ;;  %s3394_s24 = smov [#allocation5]   ;;  %s3276_s28 = scalar_lea.hbm %s3576_s1, 512 }
   0x4   :  { %s31_s25 = sshll.u32 %s3394_s24, 4  ;;  %p3277_p0 = scmp.ne.s32.totalorder %s3576_s1, %s3276_s28  ;;  %s32_s25 = int_to_ptr.vmem [resolvable:$true] %s31_s25 }
   0x5   :  { %p3280_p1 = scmp.lt.u32.totalorder %s3276_s28, %s3576_s1 }
   0x7   :  { %p3282_p2 = pnand %p3280_p1, %p3277_p0 }
   0x9   :  { %3285 = shalt.err (!%p3282_p2)
}
   0xa   :  { %s3286_s10 = scalar_lea.vmem %s32_s25, 512  ;;  %p3291_p4 = scmp.lt.s32.totalorder %s32_s25, %s32_s25 }
   0xb   :  { %p3287_p3 = scmp.ne.s32.totalorder %s32_s25, %s3286_s10  ;;  %p3292_p5 = scmp.lt.s32.totalorder %s3286_s10, %s3286_s10 }
   0xd   :  { %p3293_p6 = por %p3292_p5, %p3291_p4 }
   0xf   :  { %p3294_p7 = pnand %p3293_p6, %p3287_p3 }
  0x11   :  { %3297 = shalt.err (!%p3294_p7)
}
  0x12   :  { %s3395_s11 = smov 128   ;;  %s3396_s12 = smov 8  }
  0x13   :  { %37 = dma.hbm_to_vmem [thread:$0]  %s3576_s1, 512, %s32_s25, [#allocation6], %s3395_s11, %s3395_s11, %s3396_s12  }
  0x14   :  { %s3397_s15 = smov [#allocation2]   ;;  %s3398_s17 = smov [#allocation7]  }
  0x15   :  { %s22_s16 = sshll.u32 %s3397_s15, 4  ;;  %s45_s18 = sshll.u32 %s3398_s17, 4  ;;  %s23_s16 = int_to_ptr.vmem [resolvable:$true] %s22_s16  ;;  %s46_s18 = int_to_ptr.vmem [resolvable:$true] %s45_s18 }
  0x16   :  { %s3298_s21 = scalar_lea.hbm %s3575_s0, 128 }
  0x17   :  { %p3299_p8 = scmp.ne.s32.totalorder %s3575_s0, %s3298_s21  ;;  %p3302_p9 = scmp.lt.u32.totalorder %s3298_s21, %s3575_s0 }
  0x19   :  { %p3304_p10 = pnand %p3302_p9, %p3299_p8 }
  0x1b   :  { %3307 = shalt.err (!%p3304_p10)
}
  0x1c   :  { %s3308_s1 = scalar_lea.vmem %s23_s16, 128  ;;  %p3313_p12 = scmp.lt.s32.totalorder %s23_s16, %s23_s16 }
  0x1d   :  { %p3309_p11 = scmp.ne.s32.totalorder %s23_s16, %s3308_s1  ;;  %p3314_p13 = scmp.lt.s32.totalorder %s3308_s1, %s3308_s1 }
  0x1f   :  { %p3315_p0 = por %p3314_p13, %p3313_p12 }
  0x21   :  { %p3316_p1 = pnand %p3315_p0, %p3309_p11 }
  0x23   :  { %3319 = shalt.err (!%p3316_p1)
}
  0x24   :  { %25 = dma.hbm_to_vmem [thread:$0]  %s3575_s0, 128, %s23_s16, [#allocation3]  }
  0x25   :  { %s3320_s30 = scalar_lea.hbm %s3578_s3, 8192 }
  0x26   :  { %p3321_p2 = scmp.ne.s32.totalorder %s3578_s3, %s3320_s30  ;;  %p3324_p3 = scmp.lt.u32.totalorder %s3320_s30, %s3578_s3 }
  0x28   :  { %p3326_p4 = pnand %p3324_p3, %p3321_p2 }
  0x2a   :  { %3329 = shalt.err (!%p3326_p4)
}
  0x2b   :  { %s3330_s12 = scalar_lea.vmem %s46_s18, 8192  ;;  %p3335_p6 = scmp.lt.s32.totalorder %s46_s18, %s46_s18 }
  0x2c   :  { %p3331_p5 = scmp.ne.s32.totalorder %s46_s18, %s3330_s12  ;;  %p3336_p7 = scmp.lt.s32.totalorder %s3330_s12, %s3330_s12 }
  0x2e   :  { %p3337_p8 = por %p3336_p7, %p3335_p6 }
  0x30   :  { %p3338_p9 = pnand %p3337_p8, %p3331_p5 }
  0x32   :  { %3341 = shalt.err (!%p3338_p9)
}
  0x33   :  { %s3399_s0 = smov 256   ;;  %s3400_s13 = smov 16  }
  0x34   :  { %51 = dma.hbm_to_vmem [thread:$0]  %s3578_s3, 8192, %s46_s18, [#allocation6], %s3399_s0, %s3399_s0, %s3400_s13  }
  0x35   :  { %s3401_s16 = smov [#allocation8]   ;;  %s3342_s21 = scalar_lea.hbm %s3580_s5, 28672 }
  0x36   :  { %s59_s17 = sshll.u32 %s3401_s16, 4  ;;  %p3343_p10 = scmp.ne.s32.totalorder %s3580_s5, %s3342_s21  ;;  %s60_s17 = int_to_ptr.vmem [resolvable:$true] %s59_s17 }
  0x37   :  { %p3346_p11 = scmp.lt.u32.totalorder %s3342_s21, %s3580_s5 }
  0x39   :  { %p3348_p12 = pnand %p3346_p11, %p3343_p10 }
  0x3b   :  { %3351 = shalt.err (!%p3348_p12)
}
  0x3c   :  { %s3352_s1 = scalar_lea.vmem %s60_s17, 28672  ;;  %p3357_p0 = scmp.lt.s32.totalorder %s60_s17, %s60_s17 }
  0x3d   :  { %p3353_p13 = scmp.ne.s32.totalorder %s60_s17, %s3352_s1  ;;  %p3358_p1 = scmp.lt.s32.totalorder %s3352_s1, %s3352_s1 }
  0x3f   :  { %p3359_p2 = por %p3358_p1, %p3357_p0 }
  0x41   :  { %p3360_p3 = pnand %p3359_p2, %p3353_p13 }
  0x43   :  { %3363 = shalt.err (!%p3360_p3)
}
  0x44   :  { %s3402_s3 = smov 448   ;;  %s3403_s18 = smov 28  }
  0x45   :  { %65 = dma.hbm_to_vmem [thread:$0]  %s3580_s5, 28672, %s60_s17, [#allocation9], %s3402_s3, %s3402_s3, %s3403_s18  }
  0x46   :  { %3386 = dma.done.wait [#allocation3], 128  }
  0x47   :  { %3387 = vsyncadd [#allocation3], 4294967168 }
  0x48   :  { %3388 = dma.done.wait [#allocation6], 8704  }
  0x49   :  { %3389 = vsyncadd [#allocation6], 4294958592 }
  0x4a   :  { %3390 = dma.done.wait [#allocation9], 28672  }
  0x4b   :  { %3391 = vsyncadd [#allocation9], 4294938624  ;;  %v3404_v0 = vmov 0   ;;  %v2840_v1 = vld [vmem:[#allocation5 + $0x4] ss:$8 sps:$4 sm:$0xff]   ;;  %v81_v5 = vld [vmem:[#allocation2] sm:$0xff] }
  0x4c   :  { %155 = vmatprep.mubr.bf16.mxu0 %v3404_v0  ;;  %v2842_v2 = vld [vmem:[#allocation5] ss:$8 sps:$4 sm:$0xff]   ;;  %123 = vmatprep.subr.bf16.mxu0 %v2840_v1  ;;  %v2843_v3 = vld [vmem:[#allocation5 + $0x14] ss:$8 sps:$4 sm:$0xff]   ;;  %v2845_v4 = vld [vmem:[#allocation5 + $0x10] ss:$8 sps:$4 sm:$0xff]   ;;  %v82_v9 = vpack.c.bf16 %v81_v5, %v81_v5 }
  0x4d   :  { %124 = vmatpush1.bf16.msra.mxu0 %v2842_v2  ;;  %v2846_v6 = vld [vmem:[#allocation7 + $0x4] ss:$16 sps:$4 sm:$0xff]   ;;  %v2850_v7 = vld [vmem:[#allocation7 + $0xc] ss:$16 sps:$4 sm:$0xff]   ;;  %v2851_v8 = vld [vmem:[#allocation7] ss:$16 sps:$4 sm:$0xff]  }
  0x4e   :  { %125 = vmatprep.subr.bf16.mxu0 %v2843_v3  ;;  %576 = vmatprep.subr.bf16.mxu1 %v2846_v6  ;;  %v2852_v10 = vld [vmem:[#allocation7 + $0x24] ss:$16 sps:$4 sm:$0xff]   ;;  %vm119_vm0 = vcmask 261120   ;;  %v2848_v11 = vld [vmem:[#allocation7 + $0x8] ss:$16 sps:$4 sm:$0xff]   ;;  %vm2454_vm1 = vcmask 130048  }
  0x4f   :  { %577 = vmatpush1.bf16.msra.mxu1 %v2851_v8  ;;  %v2856_v12 = vld [vmem:[#allocation7 + $0x2c] ss:$16 sps:$4 sm:$0xff]   ;;  %v2857_v13 = vld [vmem:[#allocation7 + $0x20] ss:$16 sps:$4 sm:$0xff]   ;;  %v2858_v14 = vld [vmem:[#allocation7 + $0x44] ss:$16 sps:$4 sm:$0xff]  }
  0x50   :  { %578 = vmatprep.subr.bf16.mxu1 %v2852_v10  ;;  %v2854_v15 = vld [vmem:[#allocation7 + $0x28] ss:$16 sps:$4 sm:$0xff]   ;;  %v2862_v16 = vld [vmem:[#allocation7 + $0x4c] ss:$16 sps:$4 sm:$0xff]   ;;  %v2863_v17 = vld [vmem:[#allocation7 + $0x40] ss:$16 sps:$4 sm:$0xff]  }
  0x51   :  { %126 = vmatpush1.bf16.msra.mxu0 %v2845_v4  ;;  %v2864_v18 = vld [vmem:[#allocation7 + $0x64] ss:$16 sps:$4 sm:$0xff]   ;;  %v2860_v19 = vld [vmem:[#allocation7 + $0x48] ss:$16 sps:$4 sm:$0xff]   ;;  %v2868_v20 = vld [vmem:[#allocation7 + $0x6c] ss:$16 sps:$4 sm:$0xff]  }
  0x52   :  { %617 = vmatprep.subr.bf16.mxu0 %v2850_v7  ;;  %v2869_v21 = vld [vmem:[#allocation7 + $0x60] ss:$16 sps:$4 sm:$0xff]   ;;  %v2870_v22 = vld [vmem:[#allocation7 + $0x84] ss:$16 sps:$4 sm:$0xff]   ;;  %v2866_v23 = vld [vmem:[#allocation7 + $0x68] ss:$16 sps:$4 sm:$0xff]  }
  0x53   :  { %579 = vmatpush1.bf16.msra.mxu1 %v2857_v13  ;;  %v2874_v24 = vld [vmem:[#allocation7 + $0x8c] ss:$16 sps:$4 sm:$0xff]   ;;  %v2875_v25 = vld [vmem:[#allocation7 + $0x80] ss:$16 sps:$4 sm:$0xff]   ;;  %v2876_v26 = vld [vmem:[#allocation7 + $0xa4] ss:$16 sps:$4 sm:$0xff]  }
  0x54   :  { %2477 = vmatmul.mubr.msk.bf16.vlgmr.msra.gmra.mrb[0].mxu0 %vm119_vm0, %v82_v9  ;;  %580 = vmatprep.subr.bf16.mxu1 %v2858_v14  ;;  %v2872_v27 = vld [vmem:[#allocation7 + $0x88] ss:$16 sps:$4 sm:$0xff]   ;;  %v2880_v28 = vld [vmem:[#allocation7 + $0xac] ss:$16 sps:$4 sm:$0xff]   ;;  %v2881_v29 = vld [vmem:[#allocation7 + $0xa0] ss:$16 sps:$4 sm:$0xff]   ;;  %v89_v9 = vlaneseq }
  0x55   :  { %618 = vmatpush1.bf16.msra.mxu0 %v2848_v11  ;;  %v2882_v30 = vld [vmem:[#allocation7 + $0xc4] ss:$16 sps:$4 sm:$0xff]   ;;  %v2878_v31 = vld [vmem:[#allocation7 + $0xa8] ss:$16 sps:$4 sm:$0xff]   ;;  %v2886_v32 = vld [vmem:[#allocation7 + $0xcc] ss:$16 sps:$4 sm:$0xff]  }
  0x56   :  { %619 = vmatprep.subr.bf16.mxu0 %v2856_v12  ;;  %v2887_v33 = vld [vmem:[#allocation7 + $0xc0] ss:$16 sps:$4 sm:$0xff]   ;;  %v2888_v34 = vld [vmem:[#allocation7 + $0xe4] ss:$16 sps:$4 sm:$0xff]   ;;  %v2884_v35 = vld [vmem:[#allocation7 + $0xc8] ss:$16 sps:$4 sm:$0xff]  }
  0x57   :  { %581 = vmatpush1.bf16.msra.mxu1 %v2863_v17  ;;  %v2892_v36 = vld [vmem:[#allocation7 + $0xec] ss:$16 sps:$4 sm:$0xff]   ;;  %v2893_v37 = vld [vmem:[#allocation7 + $0xe0] ss:$16 sps:$4 sm:$0xff]   ;;  %v2894_v38 = vld [vmem:[#allocation7 + $0x104] ss:$16 sps:$4 sm:$0xff]  }
  0x58   :  { %582 = vmatprep.subr.bf16.mxu1 %v2864_v18  ;;  %v2890_v39 = vld [vmem:[#allocation7 + $0xe8] ss:$16 sps:$4 sm:$0xff]   ;;  %v2898_v40 = vld [vmem:[#allocation7 + $0x10c] ss:$16 sps:$4 sm:$0xff]   ;;  %v2899_v41 = vld [vmem:[#allocation7 + $0x100] ss:$16 sps:$4 sm:$0xff]  }
  0x59   :  { %620 = vmatpush1.bf16.msra.mxu0 %v2854_v15  ;;  %v2900_v42 = vld [vmem:[#allocation7 + $0x124] ss:$16 sps:$4 sm:$0xff]   ;;  %v2896_v43 = vld [vmem:[#allocation7 + $0x108] ss:$16 sps:$4 sm:$0xff]   ;;  %v2904_v44 = vld [vmem:[#allocation7 + $0x12c] ss:$16 sps:$4 sm:$0xff]  }
  0x5a   :  { %621 = vmatprep.subr.bf16.mxu0 %v2862_v16  ;;  %v2905_v45 = vld [vmem:[#allocation7 + $0x120] ss:$16 sps:$4 sm:$0xff]   ;;  %v2906_v46 = vld [vmem:[#allocation7 + $0x144] ss:$16 sps:$4 sm:$0xff]   ;;  %v2902_v47 = vld [vmem:[#allocation7 + $0x128] ss:$16 sps:$4 sm:$0xff]  }
  0x5b   :  { %583 = vmatpush1.bf16.msra.mxu1 %v2869_v21  ;;  %v2911_v48 = vld [vmem:[#allocation7 + $0x140] ss:$16 sps:$4 sm:$0xff]   ;;  %v2910_v49 = vld [vmem:[#allocation7 + $0x14c] ss:$16 sps:$4 sm:$0xff]   ;;  %v2912_v50 = vld [vmem:[#allocation7 + $0x164] ss:$16 sps:$4 sm:$0xff]  }
  0x5c   :  { %584 = vmatprep.subr.bf16.mxu1 %v2870_v22  ;;  %v2908_v51 = vld [vmem:[#allocation7 + $0x148] ss:$16 sps:$4 sm:$0xff]   ;;  %v2917_v52 = vld [vmem:[#allocation7 + $0x160] ss:$16 sps:$4 sm:$0xff]   ;;  %v2916_v53 = vld [vmem:[#allocation7 + $0x16c] ss:$16 sps:$4 sm:$0xff]  }
  0x5d   :  { %622 = vmatpush1.bf16.msra.mxu0 %v2860_v19  ;;  %v2918_v54 = vld [vmem:[#allocation7 + $0x184] ss:$16 sps:$4 sm:$0xff]   ;;  %v2914_v55 = vld [vmem:[#allocation7 + $0x168] ss:$16 sps:$4 sm:$0xff]   ;;  %v2923_v56 = vld [vmem:[#allocation7 + $0x180] ss:$16 sps:$4 sm:$0xff]  }
  0x5e   :  { %623 = vmatprep.subr.bf16.mxu0 %v2868_v20  ;;  %v2922_v57 = vld [vmem:[#allocation7 + $0x18c] ss:$16 sps:$4 sm:$0xff]   ;;  %v2924_v58 = vld [vmem:[#allocation7 + $0x1a4] ss:$16 sps:$4 sm:$0xff]   ;;  %v2920_v59 = vld [vmem:[#allocation7 + $0x188] ss:$16 sps:$4 sm:$0xff]  }
  0x5f   :  { %585 = vmatpush1.bf16.msra.mxu1 %v2875_v25  ;;  %v2928_v60 = vld [vmem:[#allocation7 + $0x1ac] ss:$16 sps:$4 sm:$0xff]   ;;  %v2926_v61 = vld [vmem:[#allocation7 + $0x1a8] ss:$16 sps:$4 sm:$0xff]   ;;  %v2929_v62 = vld [vmem:[#allocation7 + $0x1a0] ss:$16 sps:$4 sm:$0xff]  }
  0x60   :  { %586 = vmatprep.subr.bf16.mxu1 %v2876_v26  ;;  %v2930_v63 = vld [vmem:[#allocation7 + $0x1c4] ss:$16 sps:$4 sm:$0xff]   ;;  %v2934_v0 = vld [vmem:[#allocation7 + $0x1cc] ss:$16 sps:$4 sm:$0xff]   ;;  %v2932_v1 = vld [vmem:[#allocation7 + $0x1c8] ss:$16 sps:$4 sm:$0xff]  }
  0x61   :  { %624 = vmatpush1.bf16.msra.mxu0 %v2866_v23  ;;  %v2935_v2 = vld [vmem:[#allocation7 + $0x1c0] ss:$16 sps:$4 sm:$0xff]   ;;  %v2936_v3 = vld [vmem:[#allocation7 + $0x1e4] ss:$16 sps:$4 sm:$0xff]   ;;  %v2940_v4 = vld [vmem:[#allocation7 + $0x1ec] ss:$16 sps:$4 sm:$0xff]  }
  0x62   :  { %625 = vmatprep.subr.bf16.mxu0 %v2874_v24  ;;  %v2938_v5 = vld [vmem:[#allocation7 + $0x1e8] ss:$16 sps:$4 sm:$0xff]   ;;  %v2941_v6 = vld [vmem:[#allocation7 + $0x1e0] ss:$16 sps:$4 sm:$0xff]   ;;  %v3494_v10 = vshrl.u32 %v89_v9, 7 }
  0x63   :  { %587 = vmatpush1.bf16.msra.mxu1 %v2881_v29  ;;  %v2944_v7 = vld [vmem:[#allocation8 + $0x4] ss:$28 sps:$4 sm:$0xff]   ;;  %v2947_v8 = vld [vmem:[#allocation8 + $0xc] ss:$28 sps:$4 sm:$0xff]   ;;  %v87_v12 = vld [vmem:[%s3577_s2] sm:$0x3] }
  0x64   :  { %588 = vmatprep.subr.bf16.mxu1 %v2882_v30  ;;  %v3497_v11 = vsub.s32 0, %v3494_v10  ;;  %v3503_v13 = vsub.s32 1, %v3494_v10  ;;  %v2950_v30 = vld [vmem:[#allocation8 + $0x3c] ss:$28 sps:$4 sm:$0xff]   ;;  %v3011_v9 = vld [vmem:[#allocation8 + $0x270] ss:$28 sps:$4 sm:$0xff]  }
  0x65   :  { %626 = vmatpush1.bf16.msra.mxu0 %v2872_v27  ;;  %v2942_v27 = vld [vmem:[#allocation8] ss:$28 sps:$4 sm:$0xff]  }
  0x66   :  { %627 = vmatprep.subr.bf16.mxu0 %v2880_v28  ;;  %v92_v14 = vrot.slane %v87_v12, %v3497_v11  ;;  %v96_v15 = vrot.slane %v87_v12, %v3503_v13  ;;  %v2945_v28 = vld [vmem:[#allocation8 + $0x8] ss:$28 sps:$4 sm:$0xff]  }
  0x67   :  { %589 = vmatpush1.bf16.msra.mxu1 %v2887_v33  ;;  %v2951_v33 = vld [vmem:[#allocation8 + $0x40] ss:$28 sps:$4 sm:$0xff]  }
  0x68   :  { %590 = vmatprep.subr.bf16.mxu1 %v2888_v34  ;;  %v2956_v34 = vld [vmem:[#allocation8 + $0x74] ss:$28 sps:$4 sm:$0xff]   ;;  %v3016_v12 = vld [vmem:[#allocation8 + $0x2a4] ss:$28 sps:$4 sm:$0xff]  }
  0x69   :  { %628 = vmatpush1.bf16.msra.mxu0 %v2878_v31  ;;  %v2953_v31 = vld [vmem:[#allocation8 + $0x44] ss:$28 sps:$4 sm:$0xff]  }
  0x6a   :  { %629 = vmatprep.subr.bf16.mxu0 %v2886_v32  ;;  %v2948_v32 = vld [vmem:[#allocation8 + $0x38] ss:$28 sps:$4 sm:$0xff]  }
  0x6b   :  { %591 = vmatpush1.bf16.msra.mxu1 %v2893_v37  ;;  %v2957_v37 = vld [vmem:[#allocation8 + $0x78] ss:$28 sps:$4 sm:$0xff]  }
  0x6c   :  { %592 = vmatprep.subr.bf16.mxu1 %v2894_v38  ;;  %v2962_v38 = vld [vmem:[#allocation8 + $0xac] ss:$28 sps:$4 sm:$0xff]  }
  0x6d   :  { %630 = vmatpush1.bf16.msra.mxu0 %v2884_v35  ;;  %v2959_v35 = vld [vmem:[#allocation8 + $0x7c] ss:$28 sps:$4 sm:$0xff]  }
  0x6e   :  { %631 = vmatprep.subr.bf16.mxu0 %v2892_v36  ;;  %v2954_v36 = vld [vmem:[#allocation8 + $0x70] ss:$28 sps:$4 sm:$0xff]  }
  0x6f   :  { %593 = vmatpush1.bf16.msra.mxu1 %v2899_v41  ;;  %v2963_v41 = vld [vmem:[#allocation8 + $0xb0] ss:$28 sps:$4 sm:$0xff]  }
  0x70   :  { %594 = vmatprep.subr.bf16.mxu1 %v2900_v42  ;;  %v2968_v42 = vld [vmem:[#allocation8 + $0xe4] ss:$28 sps:$4 sm:$0xff]  }
  0x71   :  { %632 = vmatpush1.bf16.msra.mxu0 %v2890_v39  ;;  %v2965_v39 = vld [vmem:[#allocation8 + $0xb4] ss:$28 sps:$4 sm:$0xff]  }
  0x72   :  { %633 = vmatprep.subr.bf16.mxu0 %v2898_v40  ;;  %v2960_v40 = vld [vmem:[#allocation8 + $0xa8] ss:$28 sps:$4 sm:$0xff]  }
  0x73   :  { %595 = vmatpush1.bf16.msra.mxu1 %v2905_v45  ;;  %v2969_v45 = vld [vmem:[#allocation8 + $0xe8] ss:$28 sps:$4 sm:$0xff]  }
  0x74   :  { %596 = vmatprep.subr.bf16.mxu1 %v2906_v46  ;;  %v2974_v46 = vld [vmem:[#allocation8 + $0x11c] ss:$28 sps:$4 sm:$0xff]  }
  0x75   :  { %634 = vmatpush1.bf16.msra.mxu0 %v2896_v43  ;;  %v2971_v43 = vld [vmem:[#allocation8 + $0xec] ss:$28 sps:$4 sm:$0xff]  }
  0x76   :  { %635 = vmatprep.subr.bf16.mxu0 %v2904_v44  ;;  %v2966_v44 = vld [vmem:[#allocation8 + $0xe0] ss:$28 sps:$4 sm:$0xff]  }
  0x77   :  { %597 = vmatpush1.bf16.msra.mxu1 %v2911_v48  ;;  %v2972_v48 = vld [vmem:[#allocation8 + $0x118] ss:$28 sps:$4 sm:$0xff]  }
  0x78   :  { %598 = vmatprep.subr.bf16.mxu1 %v2912_v50  ;;  %v2980_v50 = vld [vmem:[#allocation8 + $0x154] ss:$28 sps:$4 sm:$0xff]  }
  0x79   :  { %636 = vmatpush1.bf16.msra.mxu0 %v2902_v47  ;;  %v2977_v47 = vld [vmem:[#allocation8 + $0x124] ss:$28 sps:$4 sm:$0xff]  }
  0x7a   :  { %637 = vmatprep.subr.bf16.mxu0 %v2910_v49  ;;  %v2975_v49 = vld [vmem:[#allocation8 + $0x120] ss:$28 sps:$4 sm:$0xff]  }
  0x7b   :  { %599 = vmatpush1.bf16.msra.mxu1 %v2917_v52  ;;  %v2978_v52 = vld [vmem:[#allocation8 + $0x150] ss:$28 sps:$4 sm:$0xff]  }
  0x7c   :  { %600 = vmatprep.subr.bf16.mxu1 %v2918_v54  ;;  %v2986_v54 = vld [vmem:[#allocation8 + $0x18c] ss:$28 sps:$4 sm:$0xff]  }
  0x7d   :  { %638 = vmatpush1.bf16.msra.mxu0 %v2908_v51  ;;  %v2983_v51 = vld [vmem:[#allocation8 + $0x15c] ss:$28 sps:$4 sm:$0xff]  }
  0x7e   :  { %639 = vmatprep.subr.bf16.mxu0 %v2916_v53  ;;  %v2981_v53 = vld [vmem:[#allocation8 + $0x158] ss:$28 sps:$4 sm:$0xff]  }
  0x7f   :  { %601 = vmatpush1.bf16.msra.mxu1 %v2923_v56  ;;  %v2984_v56 = vld [vmem:[#allocation8 + $0x188] ss:$28 sps:$4 sm:$0xff]  }
  0x80   :  { %602 = vmatprep.subr.bf16.mxu1 %v2924_v58  ;;  %v2992_v58 = vld [vmem:[#allocation8 + $0x1c4] ss:$28 sps:$4 sm:$0xff]  }
  0x81   :  { %640 = vmatpush1.bf16.msra.mxu0 %v2914_v55  ;;  %v2989_v55 = vld [vmem:[#allocation8 + $0x194] ss:$28 sps:$4 sm:$0xff]  }
  0x82   :  { %641 = vmatprep.subr.bf16.mxu0 %v2922_v57  ;;  %v2987_v57 = vld [vmem:[#allocation8 + $0x190] ss:$28 sps:$4 sm:$0xff]  }
  0x83   :  { %603 = vmatpush1.bf16.msra.mxu1 %v2929_v62  ;;  %v2998_v62 = vld [vmem:[#allocation8 + $0x1fc] ss:$28 sps:$4 sm:$0xff]  }
  0x84   :  { %604 = vmatprep.subr.bf16.mxu1 %v2930_v63  ;;  %v3001_v63 = vld [vmem:[#allocation8 + $0x204] ss:$28 sps:$4 sm:$0xff]  }
  0x85   :  { %642 = vmatpush1.bf16.msra.mxu0 %v2920_v59  ;;  %v2995_v59 = vld [vmem:[#allocation8 + $0x1cc] ss:$28 sps:$4 sm:$0xff]  }
  0x86   :  { %643 = vmatprep.subr.bf16.mxu0 %v2928_v60  ;;  %v2990_v60 = vld [vmem:[#allocation8 + $0x1c0] ss:$28 sps:$4 sm:$0xff]  }
  0x87   :  { %605 = vmatpush1.bf16.msra.mxu1 %v2935_v2  ;;  %v3004_v2 = vld [vmem:[#allocation8 + $0x234] ss:$28 sps:$4 sm:$0xff]  }
  0x88   :  { %606 = vmatprep.subr.bf16.mxu1 %v2936_v3  ;;  %v3007_v3 = vld [vmem:[#allocation8 + $0x23c] ss:$28 sps:$4 sm:$0xff]  }
  0x89   :  { %644 = vmatpush1.bf16.msra.mxu0 %v2926_v61  ;;  %v2993_v61 = vld [vmem:[#allocation8 + $0x1c8] ss:$28 sps:$4 sm:$0xff]  }
  0x8a   :  { %645 = vmatprep.subr.bf16.mxu0 %v2934_v0  ;;  %v2996_v0 = vld [vmem:[#allocation8 + $0x1f8] ss:$28 sps:$4 sm:$0xff]  }
  0x8b   :  { %607 = vmatpush1.bf16.msra.mxu1 %v2941_v6  ;;  %v3010_v6 = vld [vmem:[#allocation8 + $0x26c] ss:$28 sps:$4 sm:$0xff]  }
  0x8c   :  { %2115 = vmatprep.subr.bf16.mxu1 %v2944_v7  ;;  %v3013_v7 = vld [vmem:[#allocation8 + $0x274] ss:$28 sps:$4 sm:$0xff]  }
  0x8d   :  { %646 = vmatpush1.bf16.msra.mxu0 %v2932_v1  ;;  %v2999_v1 = vld [vmem:[#allocation8 + $0x200] ss:$28 sps:$4 sm:$0xff]  }
  0x8e   :  { %647 = vmatprep.subr.bf16.mxu0 %v2940_v4  ;;  %v3002_v4 = vld [vmem:[#allocation8 + $0x230] ss:$28 sps:$4 sm:$0xff]  }
  0x91   :  { %648 = vmatpush1.bf16.msra.mxu0 %v2938_v5  ;;  %v3005_v5 = vld [vmem:[#allocation8 + $0x238] ss:$28 sps:$4 sm:$0xff]  }
  0x92   :  { %2197 = vmatprep.subr.bf16.mxu0 %v2947_v8  ;;  %v3008_v8 = vld [vmem:[#allocation8 + $0x268] ss:$28 sps:$4 sm:$0xff]  }
 0x127   :  { %v157_v16 = vpop.f32.mrb[0].mxu0 }
 0x128   :  { %v158_v17 = vadd.f32 %v157_v16, %v92_v14  ;;  %v159_v18 = vpop.f32.mrb[1].mxu0  ;;  %v3019_v14 = vld [vmem:[#allocation8 + $0x2ac] ss:$28 sps:$4 sm:$0xff]  }
 0x129   :  { %v160_v19 = vadd.f32 %v159_v18, %v96_v15  ;;  %v161_v20 = vpop.f32.mrb[2].mxu0  ;;  %v3014_v15 = vld [vmem:[#allocation8 + $0x2a0] ss:$28 sps:$4 sm:$0xff]   ;;  %v3017_v16 = vld [vmem:[#allocation8 + $0x2a8] ss:$28 sps:$4 sm:$0xff]  }
 0x12a   :  { %v164_v21 = vmul.f32 0.2, %v158_v17  ;;  %v162_v22 = vpop.f32.mrb[3].mxu0  ;;  %v3025_v18 = vld [vmem:[#allocation8 + $0x2e4] ss:$28 sps:$4 sm:$0xff]  }
 0x12b   :  { %v165_v23 = vmul.f32 0.2, %v160_v19  ;;  %v3023_v20 = vld [vmem:[#allocation8 + $0x2e0] ss:$28 sps:$4 sm:$0xff]  }
 0x12c   :  { %v166_v24 = vmax.f32 %v158_v17, %v164_v21  ;;  %v3022_v17 = vld [vmem:[#allocation8 + $0x2dc] ss:$28 sps:$4 sm:$0xff]   ;;  %v3028_v21 = vld [vmem:[#allocation8 + $0x314] ss:$28 sps:$4 sm:$0xff]  }
 0x12d   :  { %v167_v25 = vmax.f32 %v160_v19, %v165_v23  ;;  %v3020_v19 = vld [vmem:[#allocation8 + $0x2d8] ss:$28 sps:$4 sm:$0xff]   ;;  %v3026_v23 = vld [vmem:[#allocation8 + $0x310] ss:$28 sps:$4 sm:$0xff]  }
 0x12e   :  { %v168_v29 = vpack.c.bf16 %v166_v24, %v166_v24  ;;  %v3031_v22 = vld [vmem:[#allocation8 + $0x31c] ss:$28 sps:$4 sm:$0xff]  }
 0x12f   :  { %v169_v26 = vpack.c.bf16 %v167_v25, %v167_v25  ;;  %v3029_v24 = vld [vmem:[#allocation8 + $0x318] ss:$28 sps:$4 sm:$0xff]   ;;  %v3034_v25 = vld [vmem:[#allocation8 + $0x34c] ss:$28 sps:$4 sm:$0xff]  }
 0x131   :  { %608 = vmatprep.mubr.bf16.mxu1 %v169_v26  ;;  %649 = vmatprep.mubr.bf16.mxu0 %v169_v26  ;;  %v3037_v26 = vld [vmem:[#allocation8 + $0x354] ss:$28 sps:$4 sm:$0xff]  }
 0x132   :  { %609 = vmatmul.mubr.bf16.vlgmr.msra.gmra.mrb[0].mxu1 %v168_v29  ;;  %650 = vmatmul.mubr.bf16.vlgmr.msra.gmra.mrb[4].mxu0 %v168_v29  ;;  %v3040_v29 = vld [vmem:[#allocation8 + $0x384] ss:$28 sps:$4 sm:$0xff]  }
 0x133   :  { %2116 = vmatpush1.bf16.msra.mxu1 %v2942_v27  ;;  %2198 = vmatpush1.bf16.msra.mxu0 %v2945_v28  ;;  %v3032_v27 = vld [vmem:[#allocation8 + $0x348] ss:$28 sps:$4 sm:$0xff]   ;;  %v3035_v28 = vld [vmem:[#allocation8 + $0x350] ss:$28 sps:$4 sm:$0xff]  }
 0x134   :  { %2117 = vmatprep.subr.bf16.mxu1 %v2950_v30  ;;  %2199 = vmatprep.subr.bf16.mxu0 %v2953_v31  ;;  %v3043_v30 = vld [vmem:[#allocation8 + $0x38c] ss:$28 sps:$4 sm:$0xff]   ;;  %v3510_v31 = vld [vmem:[%s3579_s4] sm:$0xf] }
 0x137   :  { %2118 = vmatpush1.bf16.msra.mxu1 %v2948_v32  ;;  %2200 = vmatpush1.bf16.msra.mxu0 %v2951_v33  ;;  %v250_v32 = vsub.s32 3, %v3494_v10  ;;  %v239_v33 = vrot.slane %v3510_v31, %v3497_v11 }
 0x138   :  { %2119 = vmatprep.subr.bf16.mxu1 %v2956_v34  ;;  %2201 = vmatprep.subr.bf16.mxu0 %v2959_v35  ;;  %v243_v34 = vrot.slane %v3510_v31, %v3503_v13 }
 0x139   :  { %v251_v35 = vrot.slane %v3510_v31, %v250_v32 }
 0x13b   :  { %2120 = vmatpush1.bf16.msra.mxu1 %v2954_v36  ;;  %2202 = vmatpush1.bf16.msra.mxu0 %v2957_v37 }
 0x13c   :  { %2121 = vmatprep.subr.bf16.mxu1 %v2962_v38  ;;  %2203 = vmatprep.subr.bf16.mxu0 %v2965_v39 }
 0x13f   :  { %2122 = vmatpush1.bf16.msra.mxu1 %v2960_v40  ;;  %2204 = vmatpush1.bf16.msra.mxu0 %v2963_v41 }
 0x140   :  { %2123 = vmatprep.subr.bf16.mxu1 %v2968_v42  ;;  %2205 = vmatprep.subr.bf16.mxu0 %v2971_v43 }
 0x143   :  { %2124 = vmatpush1.bf16.msra.mxu1 %v2966_v44  ;;  %2206 = vmatpush1.bf16.msra.mxu0 %v2969_v45 }
 0x144   :  { %2125 = vmatprep.subr.bf16.mxu1 %v2974_v46  ;;  %2207 = vmatprep.subr.bf16.mxu0 %v2977_v47 }
 0x147   :  { %2126 = vmatpush1.bf16.msra.mxu1 %v2972_v48  ;;  %2208 = vmatpush1.bf16.msra.mxu0 %v2975_v49 }
 0x148   :  { %2127 = vmatprep.subr.bf16.mxu1 %v2980_v50  ;;  %2209 = vmatprep.subr.bf16.mxu0 %v2983_v51 }
 0x14b   :  { %2128 = vmatpush1.bf16.msra.mxu1 %v2978_v52  ;;  %2210 = vmatpush1.bf16.msra.mxu0 %v2981_v53 }
 0x14c   :  { %2129 = vmatprep.subr.bf16.mxu1 %v2986_v54  ;;  %2211 = vmatprep.subr.bf16.mxu0 %v2989_v55  ;;  %v3038_v54 = vld [vmem:[#allocation8 + $0x380] ss:$28 sps:$4 sm:$0xff]   ;;  %v3041_v55 = vld [vmem:[#allocation8 + $0x388] ss:$28 sps:$4 sm:$0xff]  }
 0x14f   :  { %2130 = vmatpush1.bf16.msra.mxu1 %v2984_v56  ;;  %2212 = vmatpush1.bf16.msra.mxu0 %v2987_v57  ;;  %v3046_v57 = vld [vmem:[#allocation8 + $0x3bc] ss:$28 sps:$4 sm:$0xff]  }
 0x150   :  { %2131 = vmatprep.subr.bf16.mxu1 %v2992_v58  ;;  %2213 = vmatprep.subr.bf16.mxu0 %v2995_v59  ;;  %v3049_v58 = vld [vmem:[#allocation8 + $0x3c4] ss:$28 sps:$4 sm:$0xff]  }
 0x153   :  { %2132 = vmatpush1.bf16.msra.mxu1 %v2990_v60  ;;  %2214 = vmatpush1.bf16.msra.mxu0 %v2993_v61  ;;  %v3044_v60 = vld [vmem:[#allocation8 + $0x3b8] ss:$28 sps:$4 sm:$0xff]   ;;  %v3047_v61 = vld [vmem:[#allocation8 + $0x3c0] ss:$28 sps:$4 sm:$0xff]  }
 0x154   :  { %2133 = vmatprep.subr.bf16.mxu1 %v2998_v62  ;;  %2215 = vmatprep.subr.bf16.mxu0 %v3001_v63  ;;  %v3052_v62 = vld [vmem:[#allocation8 + $0x3f4] ss:$28 sps:$4 sm:$0xff]   ;;  %v3055_v63 = vld [vmem:[#allocation8 + $0x3fc] ss:$28 sps:$4 sm:$0xff]  }
 0x157   :  { %2134 = vmatpush1.bf16.msra.mxu1 %v2996_v0  ;;  %2216 = vmatpush1.bf16.msra.mxu0 %v2999_v1  ;;  %v3050_v0 = vld [vmem:[#allocation8 + $0x3f0] ss:$28 sps:$4 sm:$0xff]   ;;  %v3053_v1 = vld [vmem:[#allocation8 + $0x3f8] ss:$28 sps:$4 sm:$0xff]  }
 0x158   :  { %2135 = vmatprep.subr.bf16.mxu1 %v3004_v2  ;;  %2217 = vmatprep.subr.bf16.mxu0 %v3007_v3  ;;  %v3058_v2 = vld [vmem:[#allocation8 + $0x42c] ss:$28 sps:$4 sm:$0xff]   ;;  %v3061_v3 = vld [vmem:[#allocation8 + $0x434] ss:$28 sps:$4 sm:$0xff]  }
 0x15b   :  { %2136 = vmatpush1.bf16.msra.mxu1 %v3002_v4  ;;  %2218 = vmatpush1.bf16.msra.mxu0 %v3005_v5  ;;  %v3056_v4 = vld [vmem:[#allocation8 + $0x428] ss:$28 sps:$4 sm:$0xff]   ;;  %v3059_v5 = vld [vmem:[#allocation8 + $0x430] ss:$28 sps:$4 sm:$0xff]  }
 0x15c   :  { %2137 = vmatprep.subr.bf16.mxu1 %v3010_v6  ;;  %2219 = vmatprep.subr.bf16.mxu0 %v3013_v7  ;;  %v3064_v6 = vld [vmem:[#allocation8 + $0x464] ss:$28 sps:$4 sm:$0xff]   ;;  %v3067_v7 = vld [vmem:[#allocation8 + $0x46c] ss:$28 sps:$4 sm:$0xff]  }
 0x15f   :  { %2138 = vmatpush1.bf16.msra.mxu1 %v3008_v8  ;;  %2220 = vmatpush1.bf16.msra.mxu0 %v3011_v9  ;;  %v3062_v8 = vld [vmem:[#allocation8 + $0x460] ss:$28 sps:$4 sm:$0xff]   ;;  %v3065_v9 = vld [vmem:[#allocation8 + $0x468] ss:$28 sps:$4 sm:$0xff]  }
 0x160   :  { %2139 = vmatprep.subr.bf16.mxu1 %v3016_v12  ;;  %2221 = vmatprep.subr.bf16.mxu0 %v3019_v14  ;;  %v3070_v12 = vld [vmem:[#allocation8 + $0x49c] ss:$28 sps:$4 sm:$0xff]   ;;  %v3073_v14 = vld [vmem:[#allocation8 + $0x4a4] ss:$28 sps:$4 sm:$0xff]  }
 0x163   :  { %2140 = vmatpush1.bf16.msra.mxu1 %v3014_v15  ;;  %2222 = vmatpush1.bf16.msra.mxu0 %v3017_v16  ;;  %v3068_v15 = vld [vmem:[#allocation8 + $0x498] ss:$28 sps:$4 sm:$0xff]   ;;  %v3071_v16 = vld [vmem:[#allocation8 + $0x4a0] ss:$28 sps:$4 sm:$0xff]  }
 0x164   :  { %2141 = vmatprep.subr.bf16.mxu1 %v3022_v17  ;;  %2223 = vmatprep.subr.bf16.mxu0 %v3025_v18  ;;  %v3076_v17 = vld [vmem:[#allocation8 + $0x4d4] ss:$28 sps:$4 sm:$0xff]   ;;  %v3079_v18 = vld [vmem:[#allocation8 + $0x4dc] ss:$28 sps:$4 sm:$0xff]  }
 0x167   :  { %2142 = vmatpush1.bf16.msra.mxu1 %v3020_v19  ;;  %2224 = vmatpush1.bf16.msra.mxu0 %v3023_v20  ;;  %v3074_v19 = vld [vmem:[#allocation8 + $0x4d0] ss:$28 sps:$4 sm:$0xff]   ;;  %v3077_v20 = vld [vmem:[#allocation8 + $0x4d8] ss:$28 sps:$4 sm:$0xff]  }
 0x168   :  { %2143 = vmatprep.subr.bf16.mxu1 %v3028_v21  ;;  %2225 = vmatprep.subr.bf16.mxu0 %v3031_v22  ;;  %v3082_v21 = vld [vmem:[#allocation8 + $0x50c] ss:$28 sps:$4 sm:$0xff]   ;;  %v3085_v22 = vld [vmem:[#allocation8 + $0x514] ss:$28 sps:$4 sm:$0xff]  }
 0x16b   :  { %2144 = vmatpush1.bf16.msra.mxu1 %v3026_v23  ;;  %2226 = vmatpush1.bf16.msra.mxu0 %v3029_v24  ;;  %v3080_v23 = vld [vmem:[#allocation8 + $0x508] ss:$28 sps:$4 sm:$0xff]   ;;  %v3083_v24 = vld [vmem:[#allocation8 + $0x510] ss:$28 sps:$4 sm:$0xff]  }
 0x16c   :  { %2145 = vmatprep.subr.bf16.mxu1 %v3034_v25  ;;  %2227 = vmatprep.subr.bf16.mxu0 %v3037_v26  ;;  %v3088_v25 = vld [vmem:[#allocation8 + $0x544] ss:$28 sps:$4 sm:$0xff]   ;;  %v3091_v26 = vld [vmem:[#allocation8 + $0x54c] ss:$28 sps:$4 sm:$0xff]  }
 0x16f   :  { %2146 = vmatpush1.bf16.msra.mxu1 %v3032_v27  ;;  %2228 = vmatpush1.bf16.msra.mxu0 %v3035_v28  ;;  %v3086_v27 = vld [vmem:[#allocation8 + $0x540] ss:$28 sps:$4 sm:$0xff]   ;;  %v3089_v28 = vld [vmem:[#allocation8 + $0x548] ss:$28 sps:$4 sm:$0xff]  }
 0x170   :  { %2156 = vmatprep.subr.bf16.mxu1 %v3040_v29  ;;  %2238 = vmatprep.subr.bf16.mxu0 %v3043_v30  ;;  %v3094_v29 = vld [vmem:[#allocation8 + $0x57c] ss:$28 sps:$4 sm:$0xff]   ;;  %v3097_v30 = vld [vmem:[#allocation8 + $0x584] ss:$28 sps:$4 sm:$0xff]  }
 0x205   :  { %v610_v36 = vpop.f32.mrb[0].mxu1  ;;  %v3520_v37 = vpop.f32.mrb[4].mxu0 }
 0x206   :  { %v611_v38 = vadd.f32 %v610_v36, %v239_v33  ;;  %v612_v39 = vpop.f32.mrb[1].mxu1  ;;  %v653_v40 = vpop.f32.mrb[5].mxu0  ;;  %v3092_v33 = vld [vmem:[#allocation8 + $0x578] ss:$28 sps:$4 sm:$0xff]  }
 0x207   :  { %v613_v41 = vadd.f32 %v612_v39, %v243_v34  ;;  %v654_v42 = vadd.f32 %v653_v40, %v251_v35  ;;  %v614_v43 = vpop.f32.mrb[2].mxu1  ;;  %v655_v44 = vpop.f32.mrb[6].mxu0  ;;  %v3095_v34 = vld [vmem:[#allocation8 + $0x580] ss:$28 sps:$4 sm:$0xff]   ;;  %v3100_v35 = vld [vmem:[#allocation8 + $0x5b4] ss:$28 sps:$4 sm:$0xff]  }
 0x208   :  { %v658_v45 = vmul.f32 0.2, %v611_v38  ;;  %v615_v46 = vpop.f32.mrb[3].mxu1  ;;  %v656_v47 = vpop.f32.mrb[7].mxu0  ;;  %v3103_v36 = vld [vmem:[#allocation8 + $0x5bc] ss:$28 sps:$4 sm:$0xff]  }
 0x209   :  { %v659_v48 = vmul.f32 0.2, %v613_v41  ;;  %v661_v49 = vmul.f32 0.2, %v654_v42  ;;  %v3101_v39 = vld [vmem:[#allocation8 + $0x5b8] ss:$28 sps:$4 sm:$0xff]  }
 0x20a   :  { %v662_v50 = vmax.f32 %v611_v38, %v658_v45  ;;  %v3098_v38 = vld [vmem:[#allocation8 + $0x5b0] ss:$28 sps:$4 sm:$0xff]   ;;  %v246_v44 = vsub.s32 2, %v3494_v10  ;;  %v3112_v45 = vld [vmem:[#allocation8 + $0x624] ss:$28 sps:$4 sm:$0xff]  }
 0x20b   :  { %v663_v51 = vmax.f32 %v613_v41, %v659_v48  ;;  %v665_v52 = vmax.f32 %v654_v42, %v661_v49  ;;  %v3106_v40 = vld [vmem:[#allocation8 + $0x5ec] ss:$28 sps:$4 sm:$0xff]   ;;  %v3109_v41 = vld [vmem:[#allocation8 + $0x5f4] ss:$28 sps:$4 sm:$0xff]   ;;  %v3110_v47 = vld [vmem:[#allocation8 + $0x620] ss:$28 sps:$4 sm:$0xff]  }
 0x20c   :  { %v3524_v56 = vpack.c.bf16 %v662_v50, %v662_v50  ;;  %v3104_v42 = vld [vmem:[#allocation8 + $0x5e8] ss:$28 sps:$4 sm:$0xff]   ;;  %v3107_v43 = vld [vmem:[#allocation8 + $0x5f0] ss:$28 sps:$4 sm:$0xff]   ;;  %v247_v49 = vrot.slane %v3510_v31, %v246_v44  ;;  %v3118_v50 = vld [vmem:[#allocation8 + $0x65c] ss:$28 sps:$4 sm:$0xff]  }
 0x20d   :  { %v3522_v53 = vpack.c.bf16 %v663_v51, %v663_v51  ;;  %v3528_v59 = vpack.c.bf16 %v665_v52, %v665_v52  ;;  %v3115_v46 = vld [vmem:[#allocation8 + $0x62c] ss:$28 sps:$4 sm:$0xff]   ;;  %v3121_v51 = vld [vmem:[#allocation8 + $0x664] ss:$28 sps:$4 sm:$0xff]   ;;  %v3116_v52 = vld [vmem:[#allocation8 + $0x658] ss:$28 sps:$4 sm:$0xff]  }
 0x20e   :  { %v3113_v48 = vld [vmem:[#allocation8 + $0x628] ss:$28 sps:$4 sm:$0xff]  }
 0x20f   :  { %2147 = vmatprep.mubr.bf16.mxu1 %v3522_v53  ;;  %2229 = vmatprep.mubr.bf16.mxu0 %v3522_v53  ;;  %v3130_v31 = vld [vmem:[#allocation8 + $0x6cc] ss:$28 sps:$4 sm:$0xff]  }
 0x210   :  { %2148 = vmatmul.mubr.bf16.vlgmr.msra.gmra.mrb[4].mxu1 %v3524_v56  ;;  %2230 = vmatmul.mubr.bf16.vlgmr.msra.gmra.mrb[8].mxu0 %v3524_v56 }
 0x211   :  { %2157 = vmatpush1.bf16.msra.mxu1 %v3038_v54  ;;  %2239 = vmatpush1.bf16.msra.mxu0 %v3041_v55  ;;  %v3119_v54 = vld [vmem:[#allocation8 + $0x660] ss:$28 sps:$4 sm:$0xff]   ;;  %v652_v55 = vadd.f32 %v3520_v37, %v247_v49  ;;  %v3136_v37 = vld [vmem:[#allocation8 + $0x14] ss:$28 sps:$4 sm:$0xff]  }
 0x212   :  { %2188 = vmatprep.mubr.bf16.mxu1 %v3528_v59  ;;  %2270 = vmatprep.mubr.bf16.mxu0 %v3528_v59  ;;  %v3186_v49 = vld [vmem:[#allocation8 + $0x244] ss:$28 sps:$4 sm:$0xff]  }
 0x213   :  { %2158 = vmatprep.subr.bf16.mxu1 %v3046_v57  ;;  %2240 = vmatprep.subr.bf16.mxu0 %v3049_v58  ;;  %v3124_v57 = vld [vmem:[#allocation8 + $0x694] ss:$28 sps:$4 sm:$0xff]   ;;  %v3127_v58 = vld [vmem:[#allocation8 + $0x69c] ss:$28 sps:$4 sm:$0xff]  }
 0x215   :  { %2159 = vmatpush1.bf16.msra.mxu1 %v3044_v60  ;;  %2241 = vmatpush1.bf16.msra.mxu0 %v3047_v61  ;;  %v3122_v60 = vld [vmem:[#allocation8 + $0x690] ss:$28 sps:$4 sm:$0xff]   ;;  %v3125_v61 = vld [vmem:[#allocation8 + $0x698] ss:$28 sps:$4 sm:$0xff]  }
 0x216   :  { %2160 = vmatprep.subr.bf16.mxu1 %v3052_v62  ;;  %2242 = vmatprep.subr.bf16.mxu0 %v3055_v63  ;;  %v660_v62 = vmul.f32 0.2, %v652_v55  ;;  %v3133_v63 = vld [vmem:[#allocation8 + $0x6d4] ss:$28 sps:$4 sm:$0xff]  }
 0x219   :  { %2161 = vmatpush1.bf16.msra.mxu1 %v3050_v0  ;;  %2243 = vmatpush1.bf16.msra.mxu0 %v3053_v1  ;;  %v3128_v0 = vld [vmem:[#allocation8 + $0x6c8] ss:$28 sps:$4 sm:$0xff]   ;;  %v3131_v1 = vld [vmem:[#allocation8 + $0x6d0] ss:$28 sps:$4 sm:$0xff]  }
 0x21a   :  { %2162 = vmatprep.subr.bf16.mxu1 %v3058_v2  ;;  %2244 = vmatprep.subr.bf16.mxu0 %v3061_v3  ;;  %v664_v2 = vmax.f32 %v652_v55, %v660_v62  ;;  %v3137_v3 = vld [vmem:[#allocation8 + $0x1d8] ss:$28 sps:$4 sm:$0xff]   ;;  %v3192_v55 = vld [vmem:[#allocation8 + $0x600] ss:$28 sps:$4 sm:$0xff]   ;;  %v3194_v62 = vld [vmem:[#allocation8 + $0x2b0] ss:$28 sps:$4 sm:$0xff]  }
 0x21d   :  { %2163 = vmatpush1.bf16.msra.mxu1 %v3056_v4  ;;  %2245 = vmatpush1.bf16.msra.mxu0 %v3059_v5  ;;  %v3134_v4 = vld [vmem:[#allocation8 + $0x10] ss:$28 sps:$4 sm:$0xff]   ;;  %v3539_v5 = vpack.c.bf16 %v664_v2, %v664_v2 }
 0x21e   :  { %2164 = vmatprep.subr.bf16.mxu1 %v3064_v6  ;;  %2246 = vmatprep.subr.bf16.mxu0 %v3067_v7  ;;  %v3138_v6 = vld [vmem:[#allocation8 + $0x18] ss:$28 sps:$4 sm:$0xff]   ;;  %v3141_v7 = vld [vmem:[#allocation8 + $0x4c] ss:$28 sps:$4 sm:$0xff]  }
 0x21f   :  { %v3203_v2 = vld [vmem:[#allocation8 + $0x4b0] ss:$28 sps:$4 sm:$0xff]  }
 0x221   :  { %2165 = vmatpush1.bf16.msra.mxu1 %v3062_v8  ;;  %2247 = vmatpush1.bf16.msra.mxu0 %v3065_v9  ;;  %v3142_v8 = vld [vmem:[#allocation8 + $0x210] ss:$28 sps:$4 sm:$0xff]   ;;  %v3139_v9 = vld [vmem:[#allocation8 + $0x48] ss:$28 sps:$4 sm:$0xff]  }
 0x222   :  { %2166 = vmatprep.subr.bf16.mxu1 %v3070_v12  ;;  %2248 = vmatprep.subr.bf16.mxu0 %v3073_v14  ;;  %v3143_v12 = vld [vmem:[#allocation8 + $0x50] ss:$28 sps:$4 sm:$0xff]   ;;  %v3146_v14 = vld [vmem:[#allocation8 + $0x84] ss:$28 sps:$4 sm:$0xff]  }
 0x225   :  { %2167 = vmatpush1.bf16.msra.mxu1 %v3068_v15  ;;  %2249 = vmatpush1.bf16.msra.mxu0 %v3071_v16  ;;  %v3147_v15 = vld [vmem:[#allocation8 + $0x248] ss:$28 sps:$4 sm:$0xff]   ;;  %v3144_v16 = vld [vmem:[#allocation8 + $0x80] ss:$28 sps:$4 sm:$0xff]  }
 0x226   :  { %2168 = vmatprep.subr.bf16.mxu1 %v3076_v17  ;;  %2250 = vmatprep.subr.bf16.mxu0 %v3079_v18  ;;  %v3148_v17 = vld [vmem:[#allocation8 + $0x88] ss:$28 sps:$4 sm:$0xff]   ;;  %v3151_v18 = vld [vmem:[#allocation8 + $0xbc] ss:$28 sps:$4 sm:$0xff]  }
 0x229   :  { %2169 = vmatpush1.bf16.msra.mxu1 %v3074_v19  ;;  %2251 = vmatpush1.bf16.msra.mxu0 %v3077_v20  ;;  %v3152_v19 = vld [vmem:[#allocation8 + $0x280] ss:$28 sps:$4 sm:$0xff]   ;;  %v3149_v20 = vld [vmem:[#allocation8 + $0xb8] ss:$28 sps:$4 sm:$0xff]  }
 0x22a   :  { %2170 = vmatprep.subr.bf16.mxu1 %v3082_v21  ;;  %2252 = vmatprep.subr.bf16.mxu0 %v3085_v22  ;;  %v3153_v21 = vld [vmem:[#allocation8 + $0xc0] ss:$28 sps:$4 sm:$0xff]   ;;  %v3156_v22 = vld [vmem:[#allocation8 + $0xf4] ss:$28 sps:$4 sm:$0xff]  }
 0x22d   :  { %2171 = vmatpush1.bf16.msra.mxu1 %v3080_v23  ;;  %2253 = vmatpush1.bf16.msra.mxu0 %v3083_v24  ;;  %v3154_v23 = vld [vmem:[#allocation8 + $0xf0] ss:$28 sps:$4 sm:$0xff]   ;;  %v3158_v24 = vld [vmem:[#allocation8 + $0xf8] ss:$28 sps:$4 sm:$0xff]  }
 0x22e   :  { %2172 = vmatprep.subr.bf16.mxu1 %v3088_v25  ;;  %2254 = vmatprep.subr.bf16.mxu0 %v3091_v26  ;;  %v3161_v25 = vld [vmem:[#allocation8 + $0x12c] ss:$28 sps:$4 sm:$0xff]  }
 0x22f   :  { %v3162_v26 = vld [vmem:[#allocation8 + $0x2f0] ss:$28 sps:$4 sm:$0xff]  }
 0x231   :  { %2173 = vmatpush1.bf16.msra.mxu1 %v3086_v27  ;;  %2255 = vmatpush1.bf16.msra.mxu0 %v3089_v28  ;;  %v3159_v27 = vld [vmem:[#allocation8 + $0x128] ss:$28 sps:$4 sm:$0xff]   ;;  %v3163_v28 = vld [vmem:[#allocation8 + $0x130] ss:$28 sps:$4 sm:$0xff]  }
 0x232   :  { %2174 = vmatprep.subr.bf16.mxu1 %v3094_v29  ;;  %2256 = vmatprep.subr.bf16.mxu0 %v3097_v30  ;;  %v3166_v29 = vld [vmem:[#allocation8 + $0x164] ss:$28 sps:$4 sm:$0xff]  }
 0x233   :  { %v3167_v30 = vld [vmem:[#allocation8 + $0x328] ss:$28 sps:$4 sm:$0xff]  }
 0x235   :  { %2175 = vmatpush1.bf16.msra.mxu1 %v3092_v33  ;;  %2257 = vmatpush1.bf16.msra.mxu0 %v3095_v34  ;;  %v3164_v33 = vld [vmem:[#allocation8 + $0x160] ss:$28 sps:$4 sm:$0xff]   ;;  %v3168_v34 = vld [vmem:[#allocation8 + $0x168] ss:$28 sps:$4 sm:$0xff]  }
 0x236   :  { %2176 = vmatprep.subr.bf16.mxu1 %v3100_v35  ;;  %2258 = vmatprep.subr.bf16.mxu0 %v3103_v36  ;;  %v3171_v35 = vld [vmem:[#allocation8 + $0x19c] ss:$28 sps:$4 sm:$0xff]  }
 0x237   :  { %v3172_v36 = vld [vmem:[#allocation8 + $0x360] ss:$28 sps:$4 sm:$0xff]  }
 0x239   :  { %2177 = vmatpush1.bf16.msra.mxu1 %v3098_v38  ;;  %2259 = vmatpush1.bf16.msra.mxu0 %v3101_v39  ;;  %v3169_v38 = vld [vmem:[#allocation8 + $0x198] ss:$28 sps:$4 sm:$0xff]   ;;  %v3173_v39 = vld [vmem:[#allocation8 + $0x1a0] ss:$28 sps:$4 sm:$0xff]  }
 0x23a   :  { %2178 = vmatprep.subr.bf16.mxu1 %v3106_v40  ;;  %2260 = vmatprep.subr.bf16.mxu0 %v3109_v41  ;;  %v3176_v40 = vld [vmem:[#allocation8 + $0x1d4] ss:$28 sps:$4 sm:$0xff]  }
 0x23b   :  { %v3177_v41 = vld [vmem:[#allocation8 + $0x558] ss:$28 sps:$4 sm:$0xff]  }
 0x23d   :  { %2179 = vmatpush1.bf16.msra.mxu1 %v3104_v42  ;;  %2261 = vmatpush1.bf16.msra.mxu0 %v3107_v43  ;;  %v3174_v42 = vld [vmem:[#allocation8 + $0x1d0] ss:$28 sps:$4 sm:$0xff]   ;;  %v3178_v43 = vld [vmem:[#allocation8 + $0x398] ss:$28 sps:$4 sm:$0xff]  }
 0x23e   :  { %2180 = vmatprep.subr.bf16.mxu1 %v3112_v45  ;;  %2262 = vmatprep.subr.bf16.mxu0 %v3115_v46  ;;  %v3181_v45 = vld [vmem:[#allocation8 + $0x20c] ss:$28 sps:$4 sm:$0xff]  }
 0x23f   :  { %v3182_v46 = vld [vmem:[#allocation8 + $0x590] ss:$28 sps:$4 sm:$0xff]  }
 0x241   :  { %2181 = vmatpush1.bf16.msra.mxu1 %v3110_v47  ;;  %2263 = vmatpush1.bf16.msra.mxu0 %v3113_v48  ;;  %v3179_v47 = vld [vmem:[#allocation8 + $0x208] ss:$28 sps:$4 sm:$0xff]   ;;  %v3183_v48 = vld [vmem:[#allocation8 + $0x3d0] ss:$28 sps:$4 sm:$0xff]  }
 0x242   :  { %2182 = vmatprep.subr.bf16.mxu1 %v3118_v50  ;;  %2264 = vmatprep.subr.bf16.mxu0 %v3121_v51  ;;  %v3187_v50 = vld [vmem:[#allocation8 + $0x5c8] ss:$28 sps:$4 sm:$0xff]   ;;  %v3184_v51 = vld [vmem:[#allocation8 + $0x240] ss:$28 sps:$4 sm:$0xff]  }
 0x245   :  { %2183 = vmatpush1.bf16.msra.mxu1 %v3116_v52  ;;  %2265 = vmatpush1.bf16.msra.mxu0 %v3119_v54  ;;  %v3188_v52 = vld [vmem:[#allocation8 + $0x408] ss:$28 sps:$4 sm:$0xff]   ;;  %v3191_v54 = vld [vmem:[#allocation8 + $0x27c] ss:$28 sps:$4 sm:$0xff]  }
 0x246   :  { %2184 = vmatprep.subr.bf16.mxu1 %v3124_v57  ;;  %2266 = vmatprep.subr.bf16.mxu0 %v3127_v58  ;;  %v3189_v57 = vld [vmem:[#allocation8 + $0x278] ss:$28 sps:$4 sm:$0xff]   ;;  %v3193_v58 = vld [vmem:[#allocation8 + $0x440] ss:$28 sps:$4 sm:$0xff]  }
 0x249   :  { %2185 = vmatpush1.bf16.msra.mxu1 %v3122_v60  ;;  %2267 = vmatpush1.bf16.msra.mxu0 %v3125_v61  ;;  %v3196_v60 = vld [vmem:[#allocation8 + $0x2b4] ss:$28 sps:$4 sm:$0xff]  }
 0x24a   :  { %2186 = vmatprep.subr.bf16.mxu1 %v3130_v31  ;;  %2268 = vmatprep.subr.bf16.mxu0 %v3133_v63  ;;  %v3197_v61 = vld [vmem:[#allocation8 + $0x638] ss:$28 sps:$4 sm:$0xff]   ;;  %v3201_v63 = vld [vmem:[#allocation8 + $0x2ec] ss:$28 sps:$4 sm:$0xff]  }
 0x24b   :  { %v3198_v31 = vld [vmem:[#allocation8 + $0x478] ss:$28 sps:$4 sm:$0xff]  }
 0x24d   :  { %2187 = vmatpush1.bf16.msra.mxu1 %v3128_v0  ;;  %2269 = vmatpush1.bf16.msra.mxu0 %v3131_v1  ;;  %v3202_v0 = vld [vmem:[#allocation8 + $0x670] ss:$28 sps:$4 sm:$0xff]   ;;  %v3199_v1 = vld [vmem:[#allocation8 + $0x2e8] ss:$28 sps:$4 sm:$0xff]  }
 0x24e   :  { %2279 = vmatprep.subr.bf16.mxu1 %v3136_v37  ;;  %2766 = vmatprep.subr.bf16.mxu0 %v3137_v3  ;;  %v3206_v37 = vld [vmem:[#allocation8 + $0x324] ss:$28 sps:$4 sm:$0xff]  }
 0x24f   :  { %v3207_v3 = vld [vmem:[#allocation8 + $0x6a8] ss:$28 sps:$4 sm:$0xff]  }
 0x250   :  { %2189 = vmatmul.mubr.bf16.vlgmr.msra.gmra.mrb[4].mxu1 %v3539_v5  ;;  %2271 = vmatmul.mubr.bf16.vlgmr.msra.gmra.mrb[8].mxu0 %v3539_v5 }
 0x251   :  { %2280 = vmatpush1.bf16.msra.mxu1 %v3134_v4  ;;  %2311 = vmatprep.mubr.bf16.mxu1 %v3522_v53  ;;  %v3204_v4 = vld [vmem:[#allocation8 + $0x320] ss:$28 sps:$4 sm:$0xff]  }
 0x252   :  { %2767 = vmatpush3.bf16.msra.mxu0 %v3138_v6  ;;  %2393 = vmatprep.mubr.bf16.mxu0 %v3522_v53  ;;  %v3157_v53 = vld [vmem:[#allocation8 + $0x2b8] ss:$28 sps:$4 sm:$0xff]   ;;  %v3208_v6 = vld [vmem:[#allocation8 + $0x4e8] ss:$28 sps:$4 sm:$0xff]  }
 0x253   :  { %2281 = vmatprep.subr.bf16.mxu1 %v3141_v7  ;;  %2768 = vmatprep.subr.bf16.mxu0 %v3142_v8  ;;  %v3211_v7 = vld [vmem:[#allocation8 + $0x35c] ss:$28 sps:$4 sm:$0xff]  }
 0x254   :  { %v3212_v8 = vld [vmem:[#allocation8 + $0x6e0] ss:$28 sps:$4 sm:$0xff]  }
 0x255   :  { %2282 = vmatpush1.bf16.msra.mxu1 %v3139_v9  ;;  %v3209_v9 = vld [vmem:[#allocation8 + $0x358] ss:$28 sps:$4 sm:$0xff]  }
 0x256   :  { %2769 = vmatpush3.bf16.msra.mxu0 %v3143_v12  ;;  %2283 = vmatprep.subr.bf16.mxu1 %v3146_v14  ;;  %v3213_v12 = vld [vmem:[#allocation8 + $0x520] ss:$28 sps:$4 sm:$0xff]   ;;  %v3216_v14 = vld [vmem:[#allocation8 + $0x394] ss:$28 sps:$4 sm:$0xff]  }
 0x257   :  { %2770 = vmatprep.subr.bf16.mxu0 %v3147_v15  ;;  %v3214_v15 = vld [vmem:[#allocation8 + $0x390] ss:$28 sps:$4 sm:$0xff]  }
 0x259   :  { %2284 = vmatpush1.bf16.msra.mxu1 %v3144_v16  ;;  %v3219_v16 = vld [vmem:[#allocation8 + $0x3cc] ss:$28 sps:$4 sm:$0xff]  }
 0x25a   :  { %2771 = vmatpush3.bf16.msra.mxu0 %v3148_v17  ;;  %2285 = vmatprep.subr.bf16.mxu1 %v3151_v18  ;;  %v3217_v17 = vld [vmem:[#allocation8 + $0x3c8] ss:$28 sps:$4 sm:$0xff]  }
 0x25b   :  { %2772 = vmatprep.subr.bf16.mxu0 %v3152_v19  ;;  %v3222_v18 = vld [vmem:[#allocation8 + $0x404] ss:$28 sps:$4 sm:$0xff]  }
 0x25c   :  { %v3220_v19 = vld [vmem:[#allocation8 + $0x400] ss:$28 sps:$4 sm:$0xff]  }
 0x25d   :  { %2286 = vmatpush1.bf16.msra.mxu1 %v3149_v20  ;;  %v3225_v20 = vld [vmem:[#allocation8 + $0x43c] ss:$28 sps:$4 sm:$0xff]  }
 0x25e   :  { %2773 = vmatpush3.bf16.msra.mxu0 %v3153_v21  ;;  %2287 = vmatprep.subr.bf16.mxu1 %v3156_v22  ;;  %v3223_v21 = vld [vmem:[#allocation8 + $0x438] ss:$28 sps:$4 sm:$0xff]  }
 0x25f   :  { %2774 = vmatprep.subr.bf16.mxu0 %v3157_v53  ;;  %v3228_v22 = vld [vmem:[#allocation8 + $0x474] ss:$28 sps:$4 sm:$0xff]  }
 0x260   :  { %v3226_v53 = vld [vmem:[#allocation8 + $0x470] ss:$28 sps:$4 sm:$0xff]  }
 0x261   :  { %2288 = vmatpush1.bf16.msra.mxu1 %v3154_v23  ;;  %v3229_v23 = vld [vmem:[#allocation8 + $0x4a8] ss:$28 sps:$4 sm:$0xff]  }
 0x262   :  { %2775 = vmatpush3.bf16.msra.mxu0 %v3158_v24  ;;  %2289 = vmatprep.subr.bf16.mxu1 %v3161_v25  ;;  %v3234_v24 = vld [vmem:[#allocation8 + $0x4e4] ss:$28 sps:$4 sm:$0xff]   ;;  %v3237_v25 = vld [vmem:[#allocation8 + $0x51c] ss:$28 sps:$4 sm:$0xff]  }
 0x263   :  { %2776 = vmatprep.subr.bf16.mxu0 %v3162_v26  ;;  %v3235_v26 = vld [vmem:[#allocation8 + $0x518] ss:$28 sps:$4 sm:$0xff]  }
 0x265   :  { %2290 = vmatpush1.bf16.msra.mxu1 %v3159_v27  ;;  %v3240_v27 = vld [vmem:[#allocation8 + $0x554] ss:$28 sps:$4 sm:$0xff]  }
 0x266   :  { %2777 = vmatpush3.bf16.msra.mxu0 %v3163_v28  ;;  %2291 = vmatprep.subr.bf16.mxu1 %v3166_v29  ;;  %v3238_v28 = vld [vmem:[#allocation8 + $0x550] ss:$28 sps:$4 sm:$0xff]  }
 0x267   :  { %2778 = vmatprep.subr.bf16.mxu0 %v3167_v30  ;;  %v3243_v29 = vld [vmem:[#allocation8 + $0x58c] ss:$28 sps:$4 sm:$0xff]  }
 0x268   :  { %v3241_v30 = vld [vmem:[#allocation8 + $0x588] ss:$28 sps:$4 sm:$0xff]  }
 0x269   :  { %2292 = vmatpush1.bf16.msra.mxu1 %v3164_v33  ;;  %v3246_v33 = vld [vmem:[#allocation8 + $0x5c4] ss:$28 sps:$4 sm:$0xff]  }
 0x26a   :  { %2779 = vmatpush3.bf16.msra.mxu0 %v3168_v34  ;;  %2293 = vmatprep.subr.bf16.mxu1 %v3171_v35  ;;  %v3244_v34 = vld [vmem:[#allocation8 + $0x5c0] ss:$28 sps:$4 sm:$0xff]  }
 0x26b   :  { %2780 = vmatprep.subr.bf16.mxu0 %v3172_v36  ;;  %v3249_v35 = vld [vmem:[#allocation8 + $0x5fc] ss:$28 sps:$4 sm:$0xff]  }
 0x26c   :  { %v3247_v36 = vld [vmem:[#allocation8 + $0x5f8] ss:$28 sps:$4 sm:$0xff]  }
 0x26d   :  { %2294 = vmatpush1.bf16.msra.mxu1 %v3169_v38  ;;  %v3252_v38 = vld [vmem:[#allocation8 + $0x634] ss:$28 sps:$4 sm:$0xff]  }
 0x26e   :  { %2781 = vmatpush3.bf16.msra.mxu0 %v3173_v39  ;;  %2295 = vmatprep.subr.bf16.mxu1 %v3176_v40  ;;  %v3250_v39 = vld [vmem:[#allocation8 + $0x630] ss:$28 sps:$4 sm:$0xff]  }
 0x26f   :  { %2788 = vmatprep.subr.bf16.mxu0 %v3177_v41  ;;  %v3255_v40 = vld [vmem:[#allocation8 + $0x66c] ss:$28 sps:$4 sm:$0xff]  }
 0x270   :  { %v3253_v41 = vld [vmem:[#allocation8 + $0x668] ss:$28 sps:$4 sm:$0xff]  }
 0x271   :  { %2394 = vmatmul.mubr.bf16.vlgmr.msra.gmra.mrb[12].mxu0 %v3524_v56  ;;  %2296 = vmatpush1.bf16.msra.mxu1 %v3174_v42  ;;  %v3258_v42 = vld [vmem:[#allocation8 + $0x6a4] ss:$28 sps:$4 sm:$0xff]  }
 0x272   :  { %2789 = vmatpush3.bf16.msra.mxu0 %v3178_v43  ;;  %2433 = vmatprep.mubr.bf16.mxu0 %v3528_v59  ;;  %v3256_v43 = vld [vmem:[#allocation8 + $0x6a0] ss:$28 sps:$4 sm:$0xff]  }
 0x273   :  { %2297 = vmatprep.subr.bf16.mxu1 %v3181_v45  ;;  %2790 = vmatprep.subr.bf16.mxu0 %v3182_v46  ;;  %v3261_v45 = vld [vmem:[#allocation8 + $0x6dc] ss:$28 sps:$4 sm:$0xff]  }
 0x274   :  { %v3259_v46 = vld [vmem:[#allocation8 + $0x6d8] ss:$28 sps:$4 sm:$0xff]  }
 0x275   :  { %2298 = vmatpush1.bf16.msra.mxu1 %v3179_v47  ;;  %v926_v47 = vld [vmem:[%s3581_s6] sm:$0xff]  ;;  %s3405_s6 = smov [#allocation10]  }
 0x276   :  { %2791 = vmatpush3.bf16.msra.mxu0 %v3183_v48  ;;  %2299 = vmatprep.subr.bf16.mxu1 %v3186_v49  ;;  %v931_v48 = vrot.slane %v926_v47, %v3497_v11  ;;  %v939_v49 = vrot.slane %v926_v47, %v246_v44  ;;  %s2462_s8 = sshll.u32 %s3405_s6, 4  ;;  %s2463_s8 = int_to_ptr.vmem [resolvable:$true] %s2462_s8 }
 0x277   :  { %2792 = vmatprep.subr.bf16.mxu0 %v3187_v50  ;;  %v935_v50 = vrot.slane %v926_v47, %v3503_v13  ;;  %s3364_s9 = scalar_lea.vmem %s2463_s8, 896  ;;  %p3369_p5 = scmp.lt.s32.totalorder %s2463_s8, %s2463_s8 }
 0x278   :  { %p3365_p4 = scmp.ne.s32.totalorder %s2463_s8, %s3364_s9  ;;  %p3370_p6 = scmp.lt.s32.totalorder %s3364_s9, %s3364_s9 }
 0x279   :  { %2300 = vmatpush1.bf16.msra.mxu1 %v3184_v51  ;;  %v943_v51 = vrot.slane %v926_v47, %v250_v32 }
 0x27a   :  { %2793 = vmatpush3.bf16.msra.mxu0 %v3188_v52  ;;  %2301 = vmatprep.subr.bf16.mxu1 %v3191_v54  ;;  %p3371_p7 = por %p3370_p6, %p3369_p5 }
 0x27b   :  { %2794 = vmatprep.subr.bf16.mxu0 %v3192_v55 }
 0x27c   :  { %p3372_p8 = pnand %p3371_p7, %p3365_p4 }
 0x27d   :  { %2302 = vmatpush1.bf16.msra.mxu1 %v3189_v57 }
 0x27e   :  { %2795 = vmatpush3.bf16.msra.mxu0 %v3193_v58  ;;  %2303 = vmatprep.subr.bf16.mxu1 %v3196_v60 }
 0x27f   :  { %2796 = vmatprep.subr.bf16.mxu0 %v3197_v61 }
 0x281   :  { %2304 = vmatpush1.bf16.msra.mxu1 %v3194_v62 }
 0x282   :  { %2797 = vmatpush3.bf16.msra.mxu0 %v3198_v31  ;;  %2305 = vmatprep.subr.bf16.mxu1 %v3201_v63 }
 0x283   :  { %2798 = vmatprep.subr.bf16.mxu0 %v3202_v0 }
 0x285   :  { %2306 = vmatpush1.bf16.msra.mxu1 %v3199_v1 }
 0x286   :  { %2799 = vmatpush3.bf16.msra.mxu0 %v3203_v2  ;;  %2307 = vmatprep.subr.bf16.mxu1 %v3206_v37 }
 0x287   :  { %2800 = vmatprep.subr.bf16.mxu0 %v3207_v3 }
 0x289   :  { %2308 = vmatpush1.bf16.msra.mxu1 %v3204_v4 }
 0x28a   :  { %2801 = vmatpush3.bf16.msra.mxu0 %v3208_v6  ;;  %2309 = vmatprep.subr.bf16.mxu1 %v3211_v7  ;;  %v954_v6 = vsub.s32 6, %v3494_v10 }
 0x28b   :  { %2802 = vmatprep.subr.bf16.mxu0 %v3212_v8 }
 0x28c   :  { %v955_v7 = vrot.slane %v926_v47, %v954_v6 }
 0x28d   :  { %2310 = vmatpush1.bf16.msra.mxu1 %v3209_v9 }
 0x28e   :  { %2803 = vmatpush3.bf16.msra.mxu0 %v3213_v12  ;;  %2320 = vmatprep.subr.bf16.mxu1 %v3216_v14 }
 0x290   :  { %2312 = vmatmul.mubr.bf16.vlgmr.msra.gmra.mrb[8].mxu1 %v3524_v56  ;;  %v3231_v56 = vld [vmem:[#allocation8 + $0x4ac] ss:$28 sps:$4 sm:$0xff]  }
 0x291   :  { %2434 = vmatmul.mubr.bf16.vlgmr.msra.gmra.mrb[16].mxu0 %v3539_v5  ;;  %2321 = vmatpush1.bf16.msra.mxu1 %v3214_v15 }
 0x292   :  { %2352 = vmatprep.mubr.bf16.mxu1 %v3528_v59  ;;  %2322 = vmatprep.subr.bf16.mxu1 %v3219_v16  ;;  %v3232_v59 = vld [vmem:[#allocation8 + $0x4e0] ss:$28 sps:$4 sm:$0xff]  }
 0x295   :  { %2323 = vmatpush1.bf16.msra.mxu1 %v3217_v17 }
 0x296   :  { %2324 = vmatprep.subr.bf16.mxu1 %v3222_v18 }
 0x299   :  { %2325 = vmatpush1.bf16.msra.mxu1 %v3220_v19  ;;  %v946_v19 = vsub.s32 4, %v3494_v10 }
 0x29a   :  { %2326 = vmatprep.subr.bf16.mxu1 %v3225_v20  ;;  %v950_v20 = vsub.s32 5, %v3494_v10 }
 0x29d   :  { %2327 = vmatpush1.bf16.msra.mxu1 %v3223_v21  ;;  %v947_v21 = vrot.slane %v926_v47, %v946_v19 }
 0x29e   :  { %2328 = vmatprep.subr.bf16.mxu1 %v3228_v22  ;;  %v951_v22 = vrot.slane %v926_v47, %v950_v20 }
 0x2a1   :  { %2329 = vmatpush1.bf16.msra.mxu1 %v3226_v53 }
 0x2a2   :  { %2330 = vmatprep.subr.bf16.mxu1 %v3231_v56 }
 0x2a5   :  { %2331 = vmatpush1.bf16.msra.mxu1 %v3229_v23 }
 0x2a6   :  { %2332 = vmatprep.subr.bf16.mxu1 %v3234_v24 }
 0x2a9   :  { %2333 = vmatpush1.bf16.msra.mxu1 %v3232_v59 }
 0x2aa   :  { %2334 = vmatprep.subr.bf16.mxu1 %v3237_v25 }
 0x2ad   :  { %2335 = vmatpush1.bf16.msra.mxu1 %v3235_v26 }
 0x2ae   :  { %2336 = vmatprep.subr.bf16.mxu1 %v3240_v27 }
 0x2b1   :  { %2337 = vmatpush1.bf16.msra.mxu1 %v3238_v28 }
 0x2b2   :  { %2338 = vmatprep.subr.bf16.mxu1 %v3243_v29 }
 0x2b5   :  { %2339 = vmatpush1.bf16.msra.mxu1 %v3241_v30 }
 0x2b6   :  { %2340 = vmatprep.subr.bf16.mxu1 %v3246_v33 }
 0x2b9   :  { %2341 = vmatpush1.bf16.msra.mxu1 %v3244_v34 }
 0x2ba   :  { %2342 = vmatprep.subr.bf16.mxu1 %v3249_v35 }
 0x2bd   :  { %2343 = vmatpush1.bf16.msra.mxu1 %v3247_v36 }
 0x2be   :  { %2344 = vmatprep.subr.bf16.mxu1 %v3252_v38 }
 0x2c1   :  { %2345 = vmatpush1.bf16.msra.mxu1 %v3250_v39 }
 0x2c2   :  { %2346 = vmatprep.subr.bf16.mxu1 %v3255_v40 }
 0x2c5   :  { %2347 = vmatpush1.bf16.msra.mxu1 %v3253_v41 }
 0x2c6   :  { %2348 = vmatprep.subr.bf16.mxu1 %v3258_v42 }
 0x2c9   :  { %2349 = vmatpush1.bf16.msra.mxu1 %v3256_v43 }
 0x2ca   :  { %2350 = vmatprep.subr.bf16.mxu1 %v3261_v45 }
 0x2cd   :  { %2351 = vmatpush1.bf16.msra.mxu1 %v3259_v46 }
 0x2d0   :  { %2353 = vmatmul.mubr.bf16.vlgmr.msra.gmra.mrb[8].mxu1 %v3539_v5 }
 0x323   :  { %v2190_v52 = vpop.f32.mrb[4].mxu1  ;;  %v2272_v54 = vpop.f32.mrb[8].mxu0 }
 0x324   :  { %v2810_v55 = vadd.f32 %v2190_v52, %v931_v48  ;;  %v2812_v57 = vadd.f32 %v2272_v54, %v939_v49  ;;  %v2192_v58 = vpop.f32.mrb[5].mxu1  ;;  %v2274_v5 = vpop.f32.mrb[9].mxu0 }
 0x325   :  { %v2811_v60 = vadd.f32 %v2192_v58, %v935_v50  ;;  %v2813_v61 = vadd.f32 %v2274_v5, %v943_v51  ;;  %v2194_v62 = vpop.f32.mrb[6].mxu1  ;;  %v2276_v31 = vpop.f32.mrb[10].mxu0 }
 0x326   :  { %3262 = vtanh.f32 %v2810_v55  ;;  %v2195_v11 = vpop.f32.mrb[7].mxu1  ;;  %v2277_v63 = vpop.f32.mrb[11].mxu0 }
 0x327   :  { %3264 = vtanh.f32 %v2812_v57 }
 0x328   :  { %3266 = vtanh.f32 %v2811_v60 }
 0x329   :  { %3268 = vtanh.f32 %v2813_v61 }
 0x330   :  { %v3263_v13 = vpop.eup %3262 }
 0x331   :  { %v3265_v44 = vpop.eup %3264  ;;  %2448 = vst [vmem:[#allocation10] sm:$0xff] %v3263_v13 }
 0x332   :  { %v3267_v32 = vpop.eup %3266  ;;  %2450 = vst [vmem:[#allocation10 + $0x10] sm:$0xff] %v3265_v44 }
 0x333   :  { %v3269_v0 = vpop.eup %3268  ;;  %2449 = vst [vmem:[#allocation10 + $0x8] sm:$0xff] %v3267_v32 }
 0x334   :  { %2451 = vst [vmem:[#allocation10 + $0x18] sm:$0xff] %v3269_v0 }
 0x344   :  { %v2782_v1 = vpop.f32.mrb[12].mxu0 }
 0x345   :  { %v2783_v2 = vpop.f32.mrb[13].mxu0 }
 0x346   :  { %v2784_v37 = vadd.f32 %v2783_v2, %v2782_v1  ;;  %v2785_v3 = vpop.f32.mrb[14].mxu0 }
 0x347   :  { %v2786_v4 = vpop.f32.mrb[15].mxu0 }
 0x348   :  { %v2396_v12 = vadd.f32 %v2784_v37, %v955_v7 }
 0x364   :  { %v2804_v8 = vpop.f32.mrb[16].mxu0 }
 0x365   :  { %v2805_v9 = vpop.f32.mrb[17].mxu0 }
 0x366   :  { %v2806_v14 = vadd.f32 %v2805_v9, %v2804_v8  ;;  %v2807_v15 = vpop.f32.mrb[18].mxu0 }
 0x367   :  { %v2808_v16 = vpop.f32.mrb[19].mxu0 }
 0x368   :  { %v2436_v17 = vadd.f32 %v2806_v14, %v2396_v12 }
 0x36a   :  { %3270 = vtanh.f32 %v2436_v17 }
 0x374   :  { %v3271_v18 = vpop.eup %3270 }
 0x375   :  { %2455 = vst.msk [vmem:[#allocation10 + $0x30] sm:$0xff] %vm2454_vm1, %v3271_v18 }
 0x3a3   :  { %v2354_v53 = vpop.f32.mrb[8].mxu1 }
 0x3a4   :  { %v2814_v56 = vadd.f32 %v2354_v53, %v947_v21  ;;  %v2356_v23 = vpop.f32.mrb[9].mxu1 }
 0x3a5   :  { %v2815_v24 = vadd.f32 %v2356_v23, %v951_v22  ;;  %v2358_v59 = vpop.f32.mrb[10].mxu1 }
 0x3a6   :  { %3272 = vtanh.f32 %v2814_v56  ;;  %v2359_v25 = vpop.f32.mrb[11].mxu1 }
 0x3a7   :  { %3274 = vtanh.f32 %v2815_v24 }
 0x3b0   :  { %v3273_v26 = vpop.eup %3272 }
 0x3b1   :  { %v3275_v27 = vpop.eup %3274  ;;  %2452 = vst [vmem:[#allocation10 + $0x20] sm:$0xff] %v3273_v26 }
 0x3b2   :  { %2453 = vst [vmem:[#allocation10 + $0x28] sm:$0xff] %v3275_v27 }
 0x3b3   :  { %3375 = shalt.err (!%p3372_p8)
}
 0x3b4   :  { %s3376_s12 = scalar_lea.hbm %s3582_s7, 896 }
 0x3b5   :  { %p3377_p9 = scmp.ne.s32.totalorder %s3582_s7, %s3376_s12  ;;  %p3380_p10 = scmp.lt.u32.totalorder %s3376_s12, %s3582_s7 }
 0x3b7   :  { %p3382_p11 = pnand %p3380_p10, %p3377_p9 }
 0x3b9   :  { %3385 = shalt.err (!%p3382_p11)
}
 0x3ba   :  { %2465 = dma.vmem_to_hbm [thread:$0]  %s2463_s8, 896, %s3582_s7, [#allocation4]  }
 0x3bb   :  { %3392 = dma.done.wait [#allocation4], 896  }
 0x3bc   :  { %3393 = vsyncadd [#allocation4], 4294966400 }
 0x3bd   :  { %2469 = vsyncpa [#allocation3], 1 }
 0x3be   :  { %2470 = vsyncpa [#allocation6], 1 }
 0x3bf   :  { %2471 = vsyncpa [#allocation9], 1 }
 0x3c0   :  { %2472 = vsyncpa [#allocation4], 1 }

</bundles_post_ra>
